<compile_context>
chip_gen: v6e
topology: v6e:2x2x1
jax: 0.10.0
libtpu: 0.0.40
codegen_flags: <defaults>
</compile_context>

<pallas_src>
import math

import jax
import jax.numpy as jnp
from jax import lax
from jax.experimental import pallas as pl
from jax.experimental.pallas import tpu as pltpu

# ----------------------------- config (small) -------------------------------
B, S, H, F = 2, 8, 128, 256          # batch, seq, hidden, ffn
BS = B * S                            # 16: batch folded into matmul M dim
HEAD_PAD = 128                        # lane-dense padded head width
VOCAB, TYPE_VOCAB, MAX_POS = 64, 2, S
NUM_LAYERS = 2                        # ALBERT: same shared weights each layer
LN_EPS = 1e-12
NEG_INF = -1e9


def _layer_norm(x, g, b):
    # x: (M, H) f32; g, b: (1, H) f32 (implicit sublane broadcast in the mul/add)
    mu = jnp.mean(x, axis=-1, keepdims=True)
    var = jnp.mean((x - mu) ** 2, axis=-1, keepdims=True)
    return (x - mu) * lax.rsqrt(var + LN_EPS) * g + b


# ---------------------- kernel: fully fused forward --------------------------
def fused_forward_kernel(x_ref, mask_ref, wqkv_ref, wo_ref, w1_ref, w2_ref,
                         wh_ref, vec_ref, out_ref):
    f32 = jnp.float32
    bf16 = jnp.bfloat16

    # Packed (8, 384) f32 slab of all (1, .) vectors.  Slices are at 128-lane
    # boundaries; the slab itself is only 3 vregs of source data.
    vec = vec_ref[...]
    bqkv = vec[0:1, :]                        # (1, 384) = [bq | bk | bv]
    bo = vec[1:2, 0:H]
    b2 = vec[1:2, H:2 * H]
    bh = vec[1:2, 2 * H:3 * H]
    b1 = vec[2:3, 0:F]
    emb_g, emb_b = vec[3:4, 0:H], vec[3:4, H:2 * H]
    g1, be1 = vec[4:5, 0:H], vec[4:5, H:2 * H]
    g2, be2 = vec[5:6, 0:H], vec[5:6, H:2 * H]

    mb = mask_ref[...]                        # (BS, BS) additive attention bias

    # ---- embeddings already summed in wrapper; LayerNorm here ---------------
    h = _layer_norm(x_ref[...], emb_g, emb_b)                    # (BS, H) f32

    # ---- ALBERT encoder: shared weights applied NUM_LAYERS times ------------
    def layer(_, h):
        hb = h.astype(bf16)

        # Fused QKV: one (BS,128) x (128,384) MXU pass. 1/sqrt(H) folded into wq.
        qkv = jnp.dot(hb, wqkv_ref[...], preferred_element_type=f32) + bqkv
        q = qkv[:, 0:H].astype(bf16)                             # (BS, H)
        k = qkv[:, H:2 * H].astype(bf16)
        v = qkv[:, 2 * H:3 * H].astype(bf16)

        # Block-diagonal flattened attention: contraction on last dims, no k.T.
        s = lax.dot_general(q, k, (((1,), (1,)), ((), ())),
                            preferred_element_type=f32) + mb     # (BS, BS) f32
        s = s - jnp.max(s, axis=-1, keepdims=True)
        e = jnp.exp(s)                                           # cross-batch -> 0
        p = e * pl.reciprocal(jnp.sum(e, axis=-1, keepdims=True), approx=True)
        ctx = jnp.dot(p.astype(bf16), v, preferred_element_type=f32)  # (BS, H)

        attn = jnp.dot(ctx.astype(bf16), wo_ref[...],
                       preferred_element_type=f32) + bo
        h1 = _layer_norm(h + attn, g1, be1)

        f = jnp.dot(h1.astype(bf16), w1_ref[...], preferred_element_type=f32) + b1
        f = jax.nn.gelu(f, approximate=True)                     # gelu_new (tanh)
        f = jnp.dot(f.astype(bf16), w2_ref[...], preferred_element_type=f32) + b2
        return _layer_norm(h1 + f, g2, be2)

    h = lax.fori_loop(0, NUM_LAYERS, layer, h, unroll=True)

    # ---- fused heads: one lane-dense (BS, 128) projection slab ---------------
    head = jnp.dot(h.astype(bf16), wh_ref[...], preferred_element_type=f32) + bh
    out_ref[...] = head


def _fused_forward(params, x_emb, mask_bias):
    vmem = pl.BlockSpec(memory_space=pltpu.MemorySpace.VMEM)  # whole array, VMEM-resident
    args = (x_emb, mask_bias, params["wqkv"], params["wo"], params["w1"],
            params["w2"], params["w_head"], params["vec_slab"])
    return pl.pallas_call(
        fused_forward_kernel,
        out_shape=jax.ShapeDtypeStruct((BS, HEAD_PAD), jnp.float32),
        in_specs=[vmem] * len(args),
        out_specs=vmem,
    )(*args)


# ------------------------------ forward glue ---------------------------------
def bert_qa_forward(params, x, attn_mask, token_type_ids, data_flag):
    # Embedding gathers + sum are wrapper glue (data-dependent gather, not a tile).
    we = jnp.take(params["word_emb"], x, axis=0)                  # (B, S, H)
    te = jnp.take(params["type_emb"], token_type_ids, axis=0)     # (B, S, H)
    x_emb = (we + te + params["pos_emb"][None, :, :]).reshape(BS, H)

    # Combined additive attention bias: padding mask on keys + -1e9 on
    # cross-batch blocks (applied BEFORE max-subtraction -> exp() gives exact 0).
    pad = (1.0 - attn_mask.astype(jnp.float32)) * NEG_INF         # (B, S) per-key
    key_bias = jnp.broadcast_to(pad.reshape(1, BS), (BS, BS))
    same_batch = (jnp.arange(BS)[:, None] // S) == (jnp.arange(BS)[None, :] // S)
    mask_bias = jnp.where(same_batch, key_bias, NEG_INF)          # (BS, BS)

    head = _fused_forward(params, x_emb, mask_bias)               # (BS, 128)
    head = head.reshape(B, S, HEAD_PAD)

    if data_flag == "SQUAD":
        return head[:, :, 0], head[:, :, 1]
    if data_flag == "BEER":
        return jnp.squeeze(jax.nn.sigmoid(head[:, 0, 2]))
    if data_flag == "MOVIE":
        return jnp.squeeze(jax.nn.sigmoid(head[:, 0, 3]))


# ------------------------------- params --------------------------------------
def init_params(key):
    ks = jax.random.split(key, 12)
    n = lambda k, shape: 0.02 * jax.random.normal(k, shape, dtype=jnp.float32)
    bf = jnp.bfloat16
    scale = 1.0 / math.sqrt(H)   # attention score scale folded into wq/bq

    # Fused QKV weight: [wq*scale | wk | wv] -> (H, 3H)
    wq = scale * n(ks[3], (H, H))
    wk = n(ks[4], (H, H))
    wv = n(ks[5], (H, H))
    wqkv = jnp.concatenate([wq, wk, wv], axis=1).astype(bf)

    bq = scale * jnp.zeros((H,), jnp.float32)   # scaled for rigor (it is zero)
    bk = jnp.zeros((H,), jnp.float32)
    bv = jnp.zeros((H,), jnp.float32)
    bo = jnp.zeros((H,), jnp.float32)
    b1 = jnp.zeros((F,), jnp.float32)
    b2 = jnp.zeros((H,), jnp.float32)
    emb_g = jnp.ones((H,), jnp.float32)
    emb_b = jnp.zeros((H,), jnp.float32)
    ln1_g = jnp.ones((H,), jnp.float32)
    ln1_b = jnp.zeros((H,), jnp.float32)
    ln2_g = jnp.ones((H,), jnp.float32)
    ln2_b = jnp.zeros((H,), jnp.float32)

    # Combined lane-dense head: cols 0/1 = answer start/end, 2 = beer, 3 = movie.
    w_ans = n(ks[9], (H, 2))
    w_beer = n(ks[10], (H, 1))
    w_movie = n(ks[11], (H, 1))
    w_head = jnp.zeros((H, HEAD_PAD), jnp.float32)
    w_head = w_head.at[:, 0:2].set(w_ans)
    w_head = w_head.at[:, 2:3].set(w_beer)
    w_head = w_head.at[:, 3:4].set(w_movie)
    b_head = jnp.zeros((HEAD_PAD,), jnp.float32)

    # Pack all (1, .) vectors into ONE (8, 3H) f32 slab (single DMA):
    #   row 0: [bq | bk | bv]      row 1: [bo | b2 | b_head]
    #   row 2: [b1 (256) | 0]      row 3: [emb_g | emb_b | 0]
    #   row 4: [ln1_g | ln1_b | 0] row 5: [ln2_g | ln2_b | 0]
    vec = jnp.zeros((8, 3 * H), jnp.float32)
    vec = vec.at[0, 0:H].set(bq).at[0, H:2 * H].set(bk).at[0, 2 * H:3 * H].set(bv)
    vec = vec.at[1, 0:H].set(bo).at[1, H:2 * H].set(b2).at[1, 2 * H:3 * H].set(b_head)
    vec = vec.at[2, 0:F].set(b1)
    vec = vec.at[3, 0:H].set(emb_g).at[3, H:2 * H].set(emb_b)
    vec = vec.at[4, 0:H].set(ln1_g).at[4, H:2 * H].set(ln1_b)
    vec = vec.at[5, 0:H].set(ln2_g).at[5, H:2 * H].set(ln2_b)

    return dict(
        word_emb=n(ks[0], (VOCAB, H)),
        type_emb=n(ks[1], (TYPE_VOCAB, H)),
        pos_emb=n(ks[2], (MAX_POS, H)),
        wqkv=wqkv,
        wo=n(ks[6], (H, H)).astype(bf),
        w1=n(ks[7], (H, F)).astype(bf),
        w2=n(ks[8], (F, H)).astype(bf),
        w_head=w_head.astype(bf),
        vec_slab=vec,
    )


# --------------------------------- main ---------------------------------------
if __name__ == "__main__":
    key = jax.random.PRNGKey(0)
    pkey, xkey = jax.random.split(key)
    params = init_params(pkey)

    x = jax.random.randint(xkey, (B, S), 0, VOCAB, dtype=jnp.int32)
    attn_mask = jnp.ones((B, S), jnp.int32).at[1, S - 2:].set(0)
    token_type_ids = jnp.concatenate(
        [jnp.zeros((B, S // 2), jnp.int32), jnp.ones((B, S // 2), jnp.int32)], axis=1)

    start_logits, end_logits = bert_qa_forward(params, x, attn_mask, token_type_ids, "SQUAD")
    beer_sent = bert_qa_forward(params, x, attn_mask, token_type_ids, "BEER")
    movie_sent = bert_qa_forward(params, x, attn_mask, token_type_ids, "MOVIE")

    jax.block_until_ready((start_logits, end_logits, beer_sent, movie_sent))
    assert start_logits.shape == (B, S) and end_logits.shape == (B, S)
    assert beer_sent.shape == (B,) and movie_sent.shape == (B,)
    assert bool(jnp.all(jnp.isfinite(start_logits))) and bool(jnp.all(jnp.isfinite(end_logits)))
    assert bool(jnp.all((beer_sent > 0) & (beer_sent < 1)))
    assert bool(jnp.all((movie_sent > 0) & (movie_sent < 1)))
    print("KERNEL_OK")
</pallas_src>

<mosaic_0001>
module attributes {stable_mosaic.version = 11 : i64} {
  func.func @fused_forward_kernel(%arg0: memref<16x128xf32, #tpu.memory_space<vmem>>, %arg1: memref<16x16xf32, #tpu.memory_space<vmem>>, %arg2: memref<128x384xbf16, #tpu.memory_space<vmem>>, %arg3: memref<128x128xbf16, #tpu.memory_space<vmem>>, %arg4: memref<128x256xbf16, #tpu.memory_space<vmem>>, %arg5: memref<256x128xbf16, #tpu.memory_space<vmem>>, %arg6: memref<128x128xbf16, #tpu.memory_space<vmem>>, %arg7: memref<8x384xf32, #tpu.memory_space<vmem>>, %arg8: memref<16x128xf32, #tpu.memory_space<vmem>>) attributes {dimension_semantics = [], scalar_prefetch = 0 : i64, scratch_operands = 0 : i64, tpu.core_type = #tpu.core_type<tc>} {
    %c0 = arith.constant 0 : index
    %c0_0 = arith.constant 0 : index
    %0 = vector.load %arg7[%c0, %c0_0] : memref<8x384xf32, #tpu.memory_space<vmem>>, vector<8x384xf32>
    %1 = vector.extract_strided_slice %0 {offsets = [0, 0], sizes = [1, 384], strides = [1, 1]} : vector<8x384xf32> to vector<1x384xf32>
    %2 = vector.extract_strided_slice %0 {offsets = [1, 0], sizes = [1, 128], strides = [1, 1]} : vector<8x384xf32> to vector<1x128xf32>
    %3 = vector.extract_strided_slice %0 {offsets = [1, 128], sizes = [1, 128], strides = [1, 1]} : vector<8x384xf32> to vector<1x128xf32>
    %4 = vector.extract_strided_slice %0 {offsets = [1, 256], sizes = [1, 128], strides = [1, 1]} : vector<8x384xf32> to vector<1x128xf32>
    %5 = vector.extract_strided_slice %0 {offsets = [2, 0], sizes = [1, 256], strides = [1, 1]} : vector<8x384xf32> to vector<1x256xf32>
    %6 = vector.extract_strided_slice %0 {offsets = [3, 0], sizes = [1, 128], strides = [1, 1]} : vector<8x384xf32> to vector<1x128xf32>
    %7 = vector.extract_strided_slice %0 {offsets = [3, 128], sizes = [1, 128], strides = [1, 1]} : vector<8x384xf32> to vector<1x128xf32>
    %8 = vector.extract_strided_slice %0 {offsets = [4, 0], sizes = [1, 128], strides = [1, 1]} : vector<8x384xf32> to vector<1x128xf32>
    %9 = vector.extract_strided_slice %0 {offsets = [4, 128], sizes = [1, 128], strides = [1, 1]} : vector<8x384xf32> to vector<1x128xf32>
    %10 = vector.extract_strided_slice %0 {offsets = [5, 0], sizes = [1, 128], strides = [1, 1]} : vector<8x384xf32> to vector<1x128xf32>
    %11 = vector.extract_strided_slice %0 {offsets = [5, 128], sizes = [1, 128], strides = [1, 1]} : vector<8x384xf32> to vector<1x128xf32>
    %c0_1 = arith.constant 0 : index
    %c0_2 = arith.constant 0 : index
    %12 = vector.load %arg1[%c0_1, %c0_2] : memref<16x16xf32, #tpu.memory_space<vmem>>, vector<16x16xf32>
    %c0_3 = arith.constant 0 : index
    %c0_4 = arith.constant 0 : index
    %13 = vector.load %arg0[%c0_3, %c0_4] : memref<16x128xf32, #tpu.memory_space<vmem>>, vector<16x128xf32>
    %cst = arith.constant dense<0.000000e+00> : vector<16xf32>
    %14 = vector.multi_reduction <add>, %13, %cst [1] : vector<16x128xf32> to vector<16xf32>
    %15 = vector.shape_cast %14 : vector<16xf32> to vector<16x1xf32>
    %cst_5 = arith.constant 1.280000e+02 : f32
    %16 = vector.broadcast %cst_5 : f32 to vector<16x1xf32>
    %17 = arith.divf %15, %16 : vector<16x1xf32>
    %18 = vector.broadcast %17 : vector<16x1xf32> to vector<16x128xf32>
    %19 = arith.subf %13, %18 : vector<16x128xf32>
    %20 = arith.mulf %19, %19 : vector<16x128xf32>
    %cst_6 = arith.constant dense<0.000000e+00> : vector<16xf32>
    %21 = vector.multi_reduction <add>, %20, %cst_6 [1] : vector<16x128xf32> to vector<16xf32>
    %22 = vector.shape_cast %21 : vector<16xf32> to vector<16x1xf32>
    %cst_7 = arith.constant 1.280000e+02 : f32
    %23 = vector.broadcast %cst_7 : f32 to vector<16x1xf32>
    %24 = arith.divf %22, %23 : vector<16x1xf32>
    %25 = vector.broadcast %17 : vector<16x1xf32> to vector<16x128xf32>
    %26 = arith.subf %13, %25 : vector<16x128xf32>
    %cst_8 = arith.constant 9.99999996E-13 : f32
    %27 = vector.broadcast %cst_8 : f32 to vector<16x1xf32>
    %28 = arith.addf %24, %27 : vector<16x1xf32>
    %29 = math.rsqrt %28 : vector<16x1xf32>
    %30 = vector.broadcast %29 : vector<16x1xf32> to vector<16x128xf32>
    %31 = arith.mulf %26, %30 : vector<16x128xf32>
    %32 = vector.broadcast %6 : vector<1x128xf32> to vector<16x128xf32>
    %33 = arith.mulf %31, %32 : vector<16x128xf32>
    %34 = vector.broadcast %7 : vector<1x128xf32> to vector<16x128xf32>
    %35 = arith.addf %33, %34 : vector<16x128xf32>
    %c0_i32 = arith.constant 0 : i32
    %36 = arith.truncf %35 : vector<16x128xf32> to vector<16x128xbf16>
    %c0_9 = arith.constant 0 : index
    %c0_10 = arith.constant 0 : index
    %37 = vector.load %arg2[%c0_9, %c0_10] : memref<128x384xbf16, #tpu.memory_space<vmem>>, vector<128x384xbf16>
    %cst_11 = arith.constant dense<0.000000e+00> : vector<16x384xf32>
    %38 = tpu.matmul %36, %37, %cst_11 {dimension_numbers = #tpu.dot_dimension_numbers<[1], [0], [0], [1], [0, 0, 1, 1], [], []>} : vector<16x128xbf16>, vector<128x384xbf16>, vector<16x384xf32> -> vector<16x384xf32>
    %39 = vector.broadcast %1 : vector<1x384xf32> to vector<16x384xf32>
    %40 = arith.addf %38, %39 : vector<16x384xf32>
    %41 = vector.extract_strided_slice %40 {offsets = [0, 0], sizes = [16, 128], strides = [1, 1]} : vector<16x384xf32> to vector<16x128xf32>
    %42 = arith.truncf %41 : vector<16x128xf32> to vector<16x128xbf16>
    %43 = vector.extract_strided_slice %40 {offsets = [0, 128], sizes = [16, 128], strides = [1, 1]} : vector<16x384xf32> to vector<16x128xf32>
    %44 = arith.truncf %43 : vector<16x128xf32> to vector<16x128xbf16>
    %45 = vector.extract_strided_slice %40 {offsets = [0, 256], sizes = [16, 128], strides = [1, 1]} : vector<16x384xf32> to vector<16x128xf32>
    %46 = arith.truncf %45 : vector<16x128xf32> to vector<16x128xbf16>
    %cst_12 = arith.constant dense<0.000000e+00> : vector<16x16xf32>
    %47 = tpu.matmul %42, %44, %cst_12 {dimension_numbers = #tpu.dot_dimension_numbers<[1], [1], [0], [0], [0, 0, 1, 0], [], []>} : vector<16x128xbf16>, vector<16x128xbf16>, vector<16x16xf32> -> vector<16x16xf32>
    %48 = arith.addf %47, %12 : vector<16x16xf32>
    %cst_13 = arith.constant dense<0xFF800000> : vector<16xf32>
    %49 = vector.multi_reduction <maximumf>, %48, %cst_13 [1] : vector<16x16xf32> to vector<16xf32>
    %50 = vector.shape_cast %49 : vector<16xf32> to vector<16x1xf32>
    %51 = vector.broadcast %50 : vector<16x1xf32> to vector<16x16xf32>
    %52 = arith.subf %48, %51 : vector<16x16xf32>
    %53 = math.exp %52 : vector<16x16xf32>
    %cst_14 = arith.constant dense<0.000000e+00> : vector<16xf32>
    %54 = vector.multi_reduction <add>, %53, %cst_14 [1] : vector<16x16xf32> to vector<16xf32>
    %55 = vector.shape_cast %54 : vector<16xf32> to vector<16x1xf32>
    %56 = tpu.reciprocal %55 {approx = true} : vector<16x1xf32> -> vector<16x1xf32>
    %57 = vector.broadcast %56 : vector<16x1xf32> to vector<16x16xf32>
    %58 = arith.mulf %53, %57 : vector<16x16xf32>
    %59 = arith.truncf %58 : vector<16x16xf32> to vector<16x16xbf16>
    %cst_15 = arith.constant dense<0.000000e+00> : vector<16x128xf32>
    %60 = tpu.matmul %59, %46, %cst_15 {dimension_numbers = #tpu.dot_dimension_numbers<[1], [0], [0], [1], [0, 0, 1, 1], [], []>} : vector<16x16xbf16>, vector<16x128xbf16>, vector<16x128xf32> -> vector<16x128xf32>
    %61 = arith.truncf %60 : vector<16x128xf32> to vector<16x128xbf16>
    %c0_16 = arith.constant 0 : index
    %c0_17 = arith.constant 0 : index
    %62 = vector.load %arg3[%c0_16, %c0_17] : memref<128x128xbf16, #tpu.memory_space<vmem>>, vector<128x128xbf16>
    %cst_18 = arith.constant dense<0.000000e+00> : vector<16x128xf32>
    %63 = tpu.matmul %61, %62, %cst_18 {dimension_numbers = #tpu.dot_dimension_numbers<[1], [0], [0], [1], [0, 0, 1, 1], [], []>} : vector<16x128xbf16>, vector<128x128xbf16>, vector<16x128xf32> -> vector<16x128xf32>
    %64 = vector.broadcast %2 : vector<1x128xf32> to vector<16x128xf32>
    %65 = arith.addf %63, %64 : vector<16x128xf32>
    %66 = arith.addf %35, %65 : vector<16x128xf32>
    %cst_19 = arith.constant dense<0.000000e+00> : vector<16xf32>
    %67 = vector.multi_reduction <add>, %66, %cst_19 [1] : vector<16x128xf32> to vector<16xf32>
    %68 = vector.shape_cast %67 : vector<16xf32> to vector<16x1xf32>
    %cst_20 = arith.constant 1.280000e+02 : f32
    %69 = vector.broadcast %cst_20 : f32 to vector<16x1xf32>
    %70 = arith.divf %68, %69 : vector<16x1xf32>
    %71 = vector.broadcast %70 : vector<16x1xf32> to vector<16x128xf32>
    %72 = arith.subf %66, %71 : vector<16x128xf32>
    %73 = arith.mulf %72, %72 : vector<16x128xf32>
    %cst_21 = arith.constant dense<0.000000e+00> : vector<16xf32>
    %74 = vector.multi_reduction <add>, %73, %cst_21 [1] : vector<16x128xf32> to vector<16xf32>
    %75 = vector.shape_cast %74 : vector<16xf32> to vector<16x1xf32>
    %cst_22 = arith.constant 1.280000e+02 : f32
    %76 = vector.broadcast %cst_22 : f32 to vector<16x1xf32>
    %77 = arith.divf %75, %76 : vector<16x1xf32>
    %78 = vector.broadcast %70 : vector<16x1xf32> to vector<16x128xf32>
    %79 = arith.subf %66, %78 : vector<16x128xf32>
    %cst_23 = arith.constant 9.99999996E-13 : f32
    %80 = vector.broadcast %cst_23 : f32 to vector<16x1xf32>
    %81 = arith.addf %77, %80 : vector<16x1xf32>
    %82 = math.rsqrt %81 : vector<16x1xf32>
    %83 = vector.broadcast %82 : vector<16x1xf32> to vector<16x128xf32>
    %84 = arith.mulf %79, %83 : vector<16x128xf32>
    %85 = vector.broadcast %8 : vector<1x128xf32> to vector<16x128xf32>
    %86 = arith.mulf %84, %85 : vector<16x128xf32>
    %87 = vector.broadcast %9 : vector<1x128xf32> to vector<16x128xf32>
    %88 = arith.addf %86, %87 : vector<16x128xf32>
    %89 = arith.truncf %88 : vector<16x128xf32> to vector<16x128xbf16>
    %c0_24 = arith.constant 0 : index
    %c0_25 = arith.constant 0 : index
    %90 = vector.load %arg4[%c0_24, %c0_25] : memref<128x256xbf16, #tpu.memory_space<vmem>>, vector<128x256xbf16>
    %cst_26 = arith.constant dense<0.000000e+00> : vector<16x256xf32>
    %91 = tpu.matmul %89, %90, %cst_26 {dimension_numbers = #tpu.dot_dimension_numbers<[1], [0], [0], [1], [0, 0, 1, 1], [], []>} : vector<16x128xbf16>, vector<128x256xbf16>, vector<16x256xf32> -> vector<16x256xf32>
    %92 = vector.broadcast %5 : vector<1x256xf32> to vector<16x256xf32>
    %93 = arith.addf %91, %92 : vector<16x256xf32>
    %94 = arith.mulf %93, %93 : vector<16x256xf32>
    %95 = arith.mulf %93, %94 : vector<16x256xf32>
    %cst_27 = arith.constant 4.471500e-02 : f32
    %96 = vector.broadcast %cst_27 : f32 to vector<16x256xf32>
    %97 = arith.mulf %96, %95 : vector<16x256xf32>
    %98 = arith.addf %93, %97 : vector<16x256xf32>
    %cst_28 = arith.constant 0.797884583 : f32
    %99 = vector.broadcast %cst_28 : f32 to vector<16x256xf32>
    %100 = arith.mulf %99, %98 : vector<16x256xf32>
    %101 = math.tanh %100 : vector<16x256xf32>
    %cst_29 = arith.constant 1.000000e+00 : f32
    %102 = vector.broadcast %cst_29 : f32 to vector<16x256xf32>
    %103 = arith.addf %102, %101 : vector<16x256xf32>
    %cst_30 = arith.constant 5.000000e-01 : f32
    %104 = vector.broadcast %cst_30 : f32 to vector<16x256xf32>
    %105 = arith.mulf %104, %103 : vector<16x256xf32>
    %106 = arith.mulf %93, %105 : vector<16x256xf32>
    %107 = arith.truncf %106 : vector<16x256xf32> to vector<16x256xbf16>
    %c0_31 = arith.constant 0 : index
    %c0_32 = arith.constant 0 : index
    %108 = vector.load %arg5[%c0_31, %c0_32] : memref<256x128xbf16, #tpu.memory_space<vmem>>, vector<256x128xbf16>
    %cst_33 = arith.constant dense<0.000000e+00> : vector<16x128xf32>
    %109 = tpu.matmul %107, %108, %cst_33 {dimension_numbers = #tpu.dot_dimension_numbers<[1], [0], [0], [1], [0, 0, 1, 1], [], []>} : vector<16x256xbf16>, vector<256x128xbf16>, vector<16x128xf32> -> vector<16x128xf32>
    %110 = vector.broadcast %3 : vector<1x128xf32> to vector<16x128xf32>
    %111 = arith.addf %109, %110 : vector<16x128xf32>
    %112 = arith.addf %88, %111 : vector<16x128xf32>
    %cst_34 = arith.constant dense<0.000000e+00> : vector<16xf32>
    %113 = vector.multi_reduction <add>, %112, %cst_34 [1] : vector<16x128xf32> to vector<16xf32>
    %114 = vector.shape_cast %113 : vector<16xf32> to vector<16x1xf32>
    %cst_35 = arith.constant 1.280000e+02 : f32
    %115 = vector.broadcast %cst_35 : f32 to vector<16x1xf32>
    %116 = arith.divf %114, %115 : vector<16x1xf32>
    %117 = vector.broadcast %116 : vector<16x1xf32> to vector<16x128xf32>
    %118 = arith.subf %112, %117 : vector<16x128xf32>
    %119 = arith.mulf %118, %118 : vector<16x128xf32>
    %cst_36 = arith.constant dense<0.000000e+00> : vector<16xf32>
    %120 = vector.multi_reduction <add>, %119, %cst_36 [1] : vector<16x128xf32> to vector<16xf32>
    %121 = vector.shape_cast %120 : vector<16xf32> to vector<16x1xf32>
    %cst_37 = arith.constant 1.280000e+02 : f32
    %122 = vector.broadcast %cst_37 : f32 to vector<16x1xf32>
    %123 = arith.divf %121, %122 : vector<16x1xf32>
    %124 = vector.broadcast %116 : vector<16x1xf32> to vector<16x128xf32>
    %125 = arith.subf %112, %124 : vector<16x128xf32>
    %cst_38 = arith.constant 9.99999996E-13 : f32
    %126 = vector.broadcast %cst_38 : f32 to vector<16x1xf32>
    %127 = arith.addf %123, %126 : vector<16x1xf32>
    %128 = math.rsqrt %127 : vector<16x1xf32>
    %129 = vector.broadcast %128 : vector<16x1xf32> to vector<16x128xf32>
    %130 = arith.mulf %125, %129 : vector<16x128xf32>
    %131 = vector.broadcast %10 : vector<1x128xf32> to vector<16x128xf32>
    %132 = arith.mulf %130, %131 : vector<16x128xf32>
    %133 = vector.broadcast %11 : vector<1x128xf32> to vector<16x128xf32>
    %134 = arith.addf %132, %133 : vector<16x128xf32>
    %c1_i32 = arith.constant 1 : i32
    %135 = arith.truncf %134 : vector<16x128xf32> to vector<16x128xbf16>
    %c0_39 = arith.constant 0 : index
    %c0_40 = arith.constant 0 : index
    %136 = vector.load %arg2[%c0_39, %c0_40] : memref<128x384xbf16, #tpu.memory_space<vmem>>, vector<128x384xbf16>
    %cst_41 = arith.constant dense<0.000000e+00> : vector<16x384xf32>
    %137 = tpu.matmul %135, %136, %cst_41 {dimension_numbers = #tpu.dot_dimension_numbers<[1], [0], [0], [1], [0, 0, 1, 1], [], []>} : vector<16x128xbf16>, vector<128x384xbf16>, vector<16x384xf32> -> vector<16x384xf32>
    %138 = vector.broadcast %1 : vector<1x384xf32> to vector<16x384xf32>
    %139 = arith.addf %137, %138 : vector<16x384xf32>
    %140 = vector.extract_strided_slice %139 {offsets = [0, 0], sizes = [16, 128], strides = [1, 1]} : vector<16x384xf32> to vector<16x128xf32>
    %141 = arith.truncf %140 : vector<16x128xf32> to vector<16x128xbf16>
    %142 = vector.extract_strided_slice %139 {offsets = [0, 128], sizes = [16, 128], strides = [1, 1]} : vector<16x384xf32> to vector<16x128xf32>
    %143 = arith.truncf %142 : vector<16x128xf32> to vector<16x128xbf16>
    %144 = vector.extract_strided_slice %139 {offsets = [0, 256], sizes = [16, 128], strides = [1, 1]} : vector<16x384xf32> to vector<16x128xf32>
    %145 = arith.truncf %144 : vector<16x128xf32> to vector<16x128xbf16>
    %cst_42 = arith.constant dense<0.000000e+00> : vector<16x16xf32>
    %146 = tpu.matmul %141, %143, %cst_42 {dimension_numbers = #tpu.dot_dimension_numbers<[1], [1], [0], [0], [0, 0, 1, 0], [], []>} : vector<16x128xbf16>, vector<16x128xbf16>, vector<16x16xf32> -> vector<16x16xf32>
    %147 = arith.addf %146, %12 : vector<16x16xf32>
    %cst_43 = arith.constant dense<0xFF800000> : vector<16xf32>
    %148 = vector.multi_reduction <maximumf>, %147, %cst_43 [1] : vector<16x16xf32> to vector<16xf32>
    %149 = vector.shape_cast %148 : vector<16xf32> to vector<16x1xf32>
    %150 = vector.broadcast %149 : vector<16x1xf32> to vector<16x16xf32>
    %151 = arith.subf %147, %150 : vector<16x16xf32>
    %152 = math.exp %151 : vector<16x16xf32>
    %cst_44 = arith.constant dense<0.000000e+00> : vector<16xf32>
    %153 = vector.multi_reduction <add>, %152, %cst_44 [1] : vector<16x16xf32> to vector<16xf32>
    %154 = vector.shape_cast %153 : vector<16xf32> to vector<16x1xf32>
    %155 = tpu.reciprocal %154 {approx = true} : vector<16x1xf32> -> vector<16x1xf32>
    %156 = vector.broadcast %155 : vector<16x1xf32> to vector<16x16xf32>
    %157 = arith.mulf %152, %156 : vector<16x16xf32>
    %158 = arith.truncf %157 : vector<16x16xf32> to vector<16x16xbf16>
    %cst_45 = arith.constant dense<0.000000e+00> : vector<16x128xf32>
    %159 = tpu.matmul %158, %145, %cst_45 {dimension_numbers = #tpu.dot_dimension_numbers<[1], [0], [0], [1], [0, 0, 1, 1], [], []>} : vector<16x16xbf16>, vector<16x128xbf16>, vector<16x128xf32> -> vector<16x128xf32>
    %160 = arith.truncf %159 : vector<16x128xf32> to vector<16x128xbf16>
    %c0_46 = arith.constant 0 : index
    %c0_47 = arith.constant 0 : index
    %161 = vector.load %arg3[%c0_46, %c0_47] : memref<128x128xbf16, #tpu.memory_space<vmem>>, vector<128x128xbf16>
    %cst_48 = arith.constant dense<0.000000e+00> : vector<16x128xf32>
    %162 = tpu.matmul %160, %161, %cst_48 {dimension_numbers = #tpu.dot_dimension_numbers<[1], [0], [0], [1], [0, 0, 1, 1], [], []>} : vector<16x128xbf16>, vector<128x128xbf16>, vector<16x128xf32> -> vector<16x128xf32>
    %163 = vector.broadcast %2 : vector<1x128xf32> to vector<16x128xf32>
    %164 = arith.addf %162, %163 : vector<16x128xf32>
    %165 = arith.addf %134, %164 : vector<16x128xf32>
    %cst_49 = arith.constant dense<0.000000e+00> : vector<16xf32>
    %166 = vector.multi_reduction <add>, %165, %cst_49 [1] : vector<16x128xf32> to vector<16xf32>
    %167 = vector.shape_cast %166 : vector<16xf32> to vector<16x1xf32>
    %cst_50 = arith.constant 1.280000e+02 : f32
    %168 = vector.broadcast %cst_50 : f32 to vector<16x1xf32>
    %169 = arith.divf %167, %168 : vector<16x1xf32>
    %170 = vector.broadcast %169 : vector<16x1xf32> to vector<16x128xf32>
    %171 = arith.subf %165, %170 : vector<16x128xf32>
    %172 = arith.mulf %171, %171 : vector<16x128xf32>
    %cst_51 = arith.constant dense<0.000000e+00> : vector<16xf32>
    %173 = vector.multi_reduction <add>, %172, %cst_51 [1] : vector<16x128xf32> to vector<16xf32>
    %174 = vector.shape_cast %173 : vector<16xf32> to vector<16x1xf32>
    %cst_52 = arith.constant 1.280000e+02 : f32
    %175 = vector.broadcast %cst_52 : f32 to vector<16x1xf32>
    %176 = arith.divf %174, %175 : vector<16x1xf32>
    %177 = vector.broadcast %169 : vector<16x1xf32> to vector<16x128xf32>
    %178 = arith.subf %165, %177 : vector<16x128xf32>
    %cst_53 = arith.constant 9.99999996E-13 : f32
    %179 = vector.broadcast %cst_53 : f32 to vector<16x1xf32>
    %180 = arith.addf %176, %179 : vector<16x1xf32>
    %181 = math.rsqrt %180 : vector<16x1xf32>
    %182 = vector.broadcast %181 : vector<16x1xf32> to vector<16x128xf32>
    %183 = arith.mulf %178, %182 : vector<16x128xf32>
    %184 = vector.broadcast %8 : vector<1x128xf32> to vector<16x128xf32>
    %185 = arith.mulf %183, %184 : vector<16x128xf32>
    %186 = vector.broadcast %9 : vector<1x128xf32> to vector<16x128xf32>
    %187 = arith.addf %185, %186 : vector<16x128xf32>
    %188 = arith.truncf %187 : vector<16x128xf32> to vector<16x128xbf16>
    %c0_54 = arith.constant 0 : index
    %c0_55 = arith.constant 0 : index
    %189 = vector.load %arg4[%c0_54, %c0_55] : memref<128x256xbf16, #tpu.memory_space<vmem>>, vector<128x256xbf16>
    %cst_56 = arith.constant dense<0.000000e+00> : vector<16x256xf32>
    %190 = tpu.matmul %188, %189, %cst_56 {dimension_numbers = #tpu.dot_dimension_numbers<[1], [0], [0], [1], [0, 0, 1, 1], [], []>} : vector<16x128xbf16>, vector<128x256xbf16>, vector<16x256xf32> -> vector<16x256xf32>
    %191 = vector.broadcast %5 : vector<1x256xf32> to vector<16x256xf32>
    %192 = arith.addf %190, %191 : vector<16x256xf32>
    %193 = arith.mulf %192, %192 : vector<16x256xf32>
    %194 = arith.mulf %192, %193 : vector<16x256xf32>
    %cst_57 = arith.constant 4.471500e-02 : f32
    %195 = vector.broadcast %cst_57 : f32 to vector<16x256xf32>
    %196 = arith.mulf %195, %194 : vector<16x256xf32>
    %197 = arith.addf %192, %196 : vector<16x256xf32>
    %cst_58 = arith.constant 0.797884583 : f32
    %198 = vector.broadcast %cst_58 : f32 to vector<16x256xf32>
    %199 = arith.mulf %198, %197 : vector<16x256xf32>
    %200 = math.tanh %199 : vector<16x256xf32>
    %cst_59 = arith.constant 1.000000e+00 : f32
    %201 = vector.broadcast %cst_59 : f32 to vector<16x256xf32>
    %202 = arith.addf %201, %200 : vector<16x256xf32>
    %cst_60 = arith.constant 5.000000e-01 : f32
    %203 = vector.broadcast %cst_60 : f32 to vector<16x256xf32>
    %204 = arith.mulf %203, %202 : vector<16x256xf32>
    %205 = arith.mulf %192, %204 : vector<16x256xf32>
    %206 = arith.truncf %205 : vector<16x256xf32> to vector<16x256xbf16>
    %c0_61 = arith.constant 0 : index
    %c0_62 = arith.constant 0 : index
    %207 = vector.load %arg5[%c0_61, %c0_62] : memref<256x128xbf16, #tpu.memory_space<vmem>>, vector<256x128xbf16>
    %cst_63 = arith.constant dense<0.000000e+00> : vector<16x128xf32>
    %208 = tpu.matmul %206, %207, %cst_63 {dimension_numbers = #tpu.dot_dimension_numbers<[1], [0], [0], [1], [0, 0, 1, 1], [], []>} : vector<16x256xbf16>, vector<256x128xbf16>, vector<16x128xf32> -> vector<16x128xf32>
    %209 = vector.broadcast %3 : vector<1x128xf32> to vector<16x128xf32>
    %210 = arith.addf %208, %209 : vector<16x128xf32>
    %211 = arith.addf %187, %210 : vector<16x128xf32>
    %cst_64 = arith.constant dense<0.000000e+00> : vector<16xf32>
    %212 = vector.multi_reduction <add>, %211, %cst_64 [1] : vector<16x128xf32> to vector<16xf32>
    %213 = vector.shape_cast %212 : vector<16xf32> to vector<16x1xf32>
    %cst_65 = arith.constant 1.280000e+02 : f32
    %214 = vector.broadcast %cst_65 : f32 to vector<16x1xf32>
    %215 = arith.divf %213, %214 : vector<16x1xf32>
    %216 = vector.broadcast %215 : vector<16x1xf32> to vector<16x128xf32>
    %217 = arith.subf %211, %216 : vector<16x128xf32>
    %218 = arith.mulf %217, %217 : vector<16x128xf32>
    %cst_66 = arith.constant dense<0.000000e+00> : vector<16xf32>
    %219 = vector.multi_reduction <add>, %218, %cst_66 [1] : vector<16x128xf32> to vector<16xf32>
    %220 = vector.shape_cast %219 : vector<16xf32> to vector<16x1xf32>
    %cst_67 = arith.constant 1.280000e+02 : f32
    %221 = vector.broadcast %cst_67 : f32 to vector<16x1xf32>
    %222 = arith.divf %220, %221 : vector<16x1xf32>
    %223 = vector.broadcast %215 : vector<16x1xf32> to vector<16x128xf32>
    %224 = arith.subf %211, %223 : vector<16x128xf32>
    %cst_68 = arith.constant 9.99999996E-13 : f32
    %225 = vector.broadcast %cst_68 : f32 to vector<16x1xf32>
    %226 = arith.addf %222, %225 : vector<16x1xf32>
    %227 = math.rsqrt %226 : vector<16x1xf32>
    %228 = vector.broadcast %227 : vector<16x1xf32> to vector<16x128xf32>
    %229 = arith.mulf %224, %228 : vector<16x128xf32>
    %230 = vector.broadcast %10 : vector<1x128xf32> to vector<16x128xf32>
    %231 = arith.mulf %229, %230 : vector<16x128xf32>
    %232 = vector.broadcast %11 : vector<1x128xf32> to vector<16x128xf32>
    %233 = arith.addf %231, %232 : vector<16x128xf32>
    %234 = arith.truncf %233 : vector<16x128xf32> to vector<16x128xbf16>
    %c0_69 = arith.constant 0 : index
    %c0_70 = arith.constant 0 : index
    %235 = vector.load %arg6[%c0_69, %c0_70] : memref<128x128xbf16, #tpu.memory_space<vmem>>, vector<128x128xbf16>
    %cst_71 = arith.constant dense<0.000000e+00> : vector<16x128xf32>
    %236 = tpu.matmul %234, %235, %cst_71 {dimension_numbers = #tpu.dot_dimension_numbers<[1], [0], [0], [1], [0, 0, 1, 1], [], []>} : vector<16x128xbf16>, vector<128x128xbf16>, vector<16x128xf32> -> vector<16x128xf32>
    %237 = vector.broadcast %4 : vector<1x128xf32> to vector<16x128xf32>
    %238 = arith.addf %236, %237 : vector<16x128xf32>
    %c0_72 = arith.constant 0 : index
    %c0_73 = arith.constant 0 : index
    %239 = vector.load %arg8[%c0_72, %c0_73] : memref<16x128xf32, #tpu.memory_space<vmem>>, vector<16x128xf32>
    tpu.vector_store %arg8[%c0_72, %c0_73], %238 {strides = array<i32>} : memref<16x128xf32, #tpu.memory_space<vmem>>, vector<16x128xf32>,
    return
  }
}

</mosaic_0001>

<bundles_post_ra>
// kernel: tpu_custom_call.1
= control target key start
LH: loop header
LB: loop body
LE: loop exit
PB: predicated region body
PF: predicated region fallthrough
CT: control target
= control target key end

     0   :  { %13 = vsyncpa [#allocation3], 0  ;;  %s2874_s0 = inlined_call_operand.hbm [shape: f32[16,128], index: 0, kind: input, shape index: {}]   ;;  %s2875_s1 = inlined_call_operand.hbm [shape: f32[16,16], index: 1, kind: input, shape index: {}]   ;;  %s2876_s2 = inlined_call_operand.hbm [shape: bf16[128,384], index: 2, kind: input, shape index: {}]   ;;  %s2877_s3 = inlined_call_operand.hbm [shape: bf16[128,128], index: 3, kind: input, shape index: {}]   ;;  %s2878_s4 = inlined_call_operand.hbm [shape: bf16[128,256], index: 4, kind: input, shape index: {}]   ;;  %s2879_s5 = inlined_call_operand.hbm [shape: bf16[256,128], index: 5, kind: input, shape index: {}]   ;;  %s2880_s6 = inlined_call_operand.hbm [shape: bf16[128,128], index: 6, kind: input, shape index: {}]   ;;  %s2881_s7 = inlined_call_operand.hbm [shape: f32[8,384], index: 7, kind: input, shape index: {}]   ;;  %s2882_s8 = inlined_call_operand.hbm [shape: f32[16,128], index: 8, kind: output, shape index: {}]  }
   0x1   :  { %14 = vsyncpa [#allocation6], 0 }
   0x2   :  { %15 = vsyncpa [#allocation9], 0 }
   0x3   :  { %16 = vsyncpa [#allocation12], 0 }
   0x4   :  { %17 = vsyncpa [#allocation15], 0 }
   0x5   :  { %18 = vsyncpa [#allocation4], 0  ;;  %s2286_s27 = smov [#allocation5]   ;;  %s2287_s29 = smov [#allocation8]  }
   0x6   :  { %s36_s28 = sshll.u32 %s2286_s27, 4  ;;  %s60_s30 = sshll.u32 %s2287_s29, 4  ;;  %s37_s28 = int_to_ptr.vmem [resolvable:$true] %s36_s28  ;;  %s61_s30 = int_to_ptr.vmem [resolvable:$true] %s60_s30 }
   0x7   :  { %s2102_s9 = scalar_lea.vmem %s37_s28, 256  ;;  %p2107_p1 = scmp.lt.s32.totalorder %s37_s28, %s37_s28 }
   0x8   :  { %p2103_p0 = scmp.ne.s32.totalorder %s37_s28, %s2102_s9  ;;  %p2108_p2 = scmp.lt.s32.totalorder %s2102_s9, %s2102_s9 }
   0xa   :  { %p2109_p3 = por %p2108_p2, %p2107_p1 }
   0xc   :  { %p2110_p4 = pnand %p2109_p3, %p2103_p0 }
   0xe   :  { %2113 = shalt.err (!%p2110_p4)
}
   0xf   :  { %s2288_s10 = smov 128   ;;  %s2289_s11 = smov 8  }
  0x10   :  { %42 = dma.hbm_to_vmem [thread:$0]  %s2875_s1, 256, %s37_s28, [#allocation6], %s2288_s10, %s2288_s10, %s2289_s11  }
  0x11   :  { %s2122_s14 = scalar_lea.vmem %s61_s30, 1024  ;;  %p2127_p6 = scmp.lt.s32.totalorder %s61_s30, %s61_s30 }
  0x12   :  { %p2123_p5 = scmp.ne.s32.totalorder %s61_s30, %s2122_s14  ;;  %p2128_p7 = scmp.lt.s32.totalorder %s2122_s14, %s2122_s14 }
  0x14   :  { %p2129_p8 = por %p2128_p7, %p2127_p6 }
  0x16   :  { %p2130_p9 = pnand %p2129_p8, %p2123_p5 }
  0x18   :  { %2133 = shalt.err (!%p2130_p9)
}
  0x19   :  { %s2290_s15 = smov 64   ;;  %s2291_s16 = smov 4  }
  0x1a   :  { %66 = dma.hbm_to_vmem [thread:$0]  %s2877_s3, 1024, %s61_s30, [#allocation9], %s2290_s15, %s2290_s15, %s2291_s16  }
  0x1b   :  { %s2292_s19 = smov [#allocation11]   ;;  %s2293_s21 = smov [#allocation2]  }
  0x1c   :  { %s84_s20 = sshll.u32 %s2292_s19, 4  ;;  %s24_s1 = sshll.u32 %s2293_s21, 4  ;;  %s85_s20 = int_to_ptr.vmem [resolvable:$true] %s84_s20  ;;  %s25_s1 = int_to_ptr.vmem [resolvable:$true] %s24_s1 }
  0x1d   :  { %s2142_s22 = scalar_lea.vmem %s85_s20, 2048  ;;  %p2147_p11 = scmp.lt.s32.totalorder %s85_s20, %s85_s20 }
  0x1e   :  { %p2143_p10 = scmp.ne.s32.totalorder %s85_s20, %s2142_s22  ;;  %p2148_p12 = scmp.lt.s32.totalorder %s2142_s22, %s2142_s22 }
  0x20   :  { %p2149_p13 = por %p2148_p12, %p2147_p11 }
  0x22   :  { %p2150_p0 = pnand %p2149_p13, %p2143_p10 }
  0x24   :  { %2153 = shalt.err (!%p2150_p0)
}
  0x25   :  { %90 = dma.hbm_to_vmem [thread:$0]  %s2879_s5, 2048, %s85_s20, [#allocation12], %s2290_s15, %s2290_s15, %s2291_s16  }
  0x26   :  { %s2162_s3 = scalar_lea.vmem %s25_s1, 256  ;;  %p2167_p2 = scmp.lt.s32.totalorder %s25_s1, %s25_s1 }
  0x27   :  { %p2163_p1 = scmp.ne.s32.totalorder %s25_s1, %s2162_s3  ;;  %p2168_p3 = scmp.lt.s32.totalorder %s2162_s3, %s2162_s3 }
  0x29   :  { %p2169_p4 = por %p2168_p3, %p2167_p2 }
  0x2b   :  { %p2170_p5 = pnand %p2169_p4, %p2163_p1 }
  0x2d   :  { %2173 = shalt.err (!%p2170_p5)
}
  0x2e   :  { %30 = dma.hbm_to_vmem [thread:$0]  %s2874_s0, 256, %s25_s1, [#allocation3], %s2288_s10, %s2288_s10, %s2289_s11  }
  0x2f   :  { %s2294_s27 = smov [#allocation7]  }
  0x30   :  { %s48_s28 = sshll.u32 %s2294_s27, 4  ;;  %s49_s28 = int_to_ptr.vmem [resolvable:$true] %s48_s28 }
  0x31   :  { %s2182_s29 = scalar_lea.vmem %s49_s28, 3072  ;;  %p2187_p7 = scmp.lt.s32.totalorder %s49_s28, %s49_s28 }
  0x32   :  { %p2183_p6 = scmp.ne.s32.totalorder %s49_s28, %s2182_s29  ;;  %p2188_p8 = scmp.lt.s32.totalorder %s2182_s29, %s2182_s29 }
  0x34   :  { %p2189_p9 = por %p2188_p8, %p2187_p7 }
  0x36   :  { %p2190_p10 = pnand %p2189_p9, %p2183_p6 }
  0x38   :  { %2193 = shalt.err (!%p2190_p10)
}
  0x39   :  { %s2295_s5 = smov 192   ;;  %s2296_s30 = smov 12  }
  0x3a   :  { %54 = dma.hbm_to_vmem [thread:$0]  %s2876_s2, 3072, %s49_s28, [#allocation6], %s2295_s5, %s2295_s5, %s2296_s30  }
  0x3b   :  { %s2297_s13 = smov [#allocation10]   ;;  %s2298_s0 = smov [#allocation13]  }
  0x3c   :  { %s72_s14 = sshll.u32 %s2297_s13, 4  ;;  %s96_s17 = sshll.u32 %s2298_s0, 4  ;;  %s73_s14 = int_to_ptr.vmem [resolvable:$true] %s72_s14  ;;  %s97_s17 = int_to_ptr.vmem [resolvable:$true] %s96_s17 }
  0x3d   :  { %s2202_s18 = scalar_lea.vmem %s73_s14, 2048  ;;  %p2207_p12 = scmp.lt.s32.totalorder %s73_s14, %s73_s14 }
  0x3e   :  { %p2203_p11 = scmp.ne.s32.totalorder %s73_s14, %s2202_s18  ;;  %p2208_p13 = scmp.lt.s32.totalorder %s2202_s18, %s2202_s18 }
  0x40   :  { %p2209_p0 = por %p2208_p13, %p2207_p12 }
  0x42   :  { %p2210_p1 = pnand %p2209_p0, %p2203_p11 }
  0x44   :  { %2213 = shalt.err (!%p2210_p1)
}
  0x45   :  { %78 = dma.hbm_to_vmem [thread:$0]  %s2878_s4, 2048, %s73_s14, [#allocation9], %s2288_s10, %s2288_s10, %s2289_s11  }
  0x46   :  { %s2222_s2 = scalar_lea.vmem %s97_s17, 1024  ;;  %p2227_p3 = scmp.lt.s32.totalorder %s97_s17, %s97_s17 }
  0x47   :  { %p2223_p2 = scmp.ne.s32.totalorder %s97_s17, %s2222_s2  ;;  %p2228_p4 = scmp.lt.s32.totalorder %s2222_s2, %s2222_s2 }
  0x49   :  { %p2229_p5 = por %p2228_p4, %p2227_p3 }
  0x4b   :  { %p2230_p6 = pnand %p2229_p5, %p2223_p2 }
  0x4d   :  { %2233 = shalt.err (!%p2230_p6)
}
  0x4e   :  { %102 = dma.hbm_to_vmem [thread:$0]  %s2880_s6, 1024, %s97_s17, [#allocation12], %s2290_s15, %s2290_s15, %s2291_s16  }
  0x4f   :  { %s2299_s22 = smov [#allocation14]  }
  0x50   :  { %s109_s23 = sshll.u32 %s2299_s22, 4  ;;  %s110_s23 = int_to_ptr.vmem [resolvable:$true] %s109_s23 }
  0x51   :  { %s2242_s24 = scalar_lea.vmem %s110_s23, 384  ;;  %p2247_p8 = scmp.lt.s32.totalorder %s110_s23, %s110_s23 }
  0x52   :  { %p2243_p7 = scmp.ne.s32.totalorder %s110_s23, %s2242_s24  ;;  %p2248_p9 = scmp.lt.s32.totalorder %s2242_s24, %s2242_s24 }
  0x54   :  { %p2249_p10 = por %p2248_p9, %p2247_p8 }
  0x56   :  { %p2250_p11 = pnand %p2249_p10, %p2243_p7 }
  0x58   :  { %2253 = shalt.err (!%p2250_p11)
}
  0x59   :  { %112 = dma.hbm_to_vmem [thread:$0]  %s2881_s7, 384, %s110_s23, [#allocation15]  }
  0x5a   :  { %2274 = dma.done.wait [#allocation3], 256  }
  0x5b   :  { %2275 = vsyncadd [#allocation3], 4294967040 }
  0x5c   :  { %2276 = dma.done.wait [#allocation6], 3328  }
  0x5d   :  { %2277 = vsyncadd [#allocation6], 4294963968 }
  0x5e   :  { %2278 = dma.done.wait [#allocation9], 3072  }
  0x5f   :  { %2279 = vsyncadd [#allocation9], 4294964224 }
  0x60   :  { %2280 = dma.done.wait [#allocation12], 3072  }
  0x61   :  { %2281 = vsyncadd [#allocation12], 4294964224 }
  0x62   :  { %2282 = dma.done.wait [#allocation15], 384  }
  0x63   :  { %2283 = vsyncadd [#allocation15], 4294966912  ;;  %v143_v0 = vld [vmem:[#allocation2] sm:$0xff]  ;;  %v144_v1 = vld [vmem:[#allocation2 + $0x8] sm:$0xff]  ;;  %v2883_v4 = vmov 0.0   ;;  %v2885_v27 = vmov 0   ;;  %v168_v42 = vlaneseq }
  0x64   :  { %145 = vadd.xlane.f32.xlu0 %v143_v0  ;;  %v2391_v2 = vld [vmem:[#allocation7 + $0xac] ss:$12 sps:$4 sm:$0xff]   ;;  %v2393_v3 = vld [vmem:[#allocation7 + $0xa8] ss:$12 sps:$4 sm:$0xff]   ;;  %1811 = vmatprep.subr.bf16.mxu1 %v2883_v4  ;;  %v2396_v5 = vld [vmem:[#allocation7 + $0xb0] ss:$12 sps:$4 sm:$0xff]  }
  0x65   :  { %353 = vmatprep.subr.bf16.mxu0 %v2391_v2  ;;  %1812 = vmatpush3.bf16.msra.mxu1 %v2396_v5  ;;  %v2410_v14 = vld [vmem:[#allocation7 + $0x94] ss:$12 sps:$4 sm:$0xff]   ;;  %v2412_v15 = vld [vmem:[#allocation7 + $0x90] ss:$12 sps:$4 sm:$0xff]   ;;  %v2414_v16 = vld [vmem:[#allocation7 + $0x98] ss:$12 sps:$4 sm:$0xff]  }
  0x66   :  { %354 = vmatpush1.bf16.msra.mxu0 %v2393_v3  ;;  %1813 = vmatprep.subr.bf16.mxu1 %v2883_v4  ;;  %v2419_v17 = vld [vmem:[#allocation7 + $0x7c] ss:$12 sps:$4 sm:$0xff]   ;;  %v2422_v18 = vld [vmem:[#allocation7 + $0x78] ss:$12 sps:$4 sm:$0xff]   ;;  %v2424_v19 = vld [vmem:[#allocation7 + $0x80] ss:$12 sps:$4 sm:$0xff]  }
  0x67   :  { %355 = vmatprep.subr.bf16.mxu0 %v2410_v14  ;;  %v2429_v20 = vld [vmem:[#allocation7 + $0x64] ss:$12 sps:$4 sm:$0xff]   ;;  %v2432_v21 = vld [vmem:[#allocation7 + $0x60] ss:$12 sps:$4 sm:$0xff]   ;;  %v2434_v22 = vld [vmem:[#allocation7 + $0x68] ss:$12 sps:$4 sm:$0xff]   ;;  %385 = vmatprep.mubr.bf16.mxu0 %v2885_v27 }
  0x68   :  { %147 = vadd.xlane.f32.xlu0 %v144_v1  ;;  %v2436_v23 = vld [vmem:[#allocation7 + $0x4c] ss:$12 sps:$4 sm:$0xff]   ;;  %v2441_v24 = vld [vmem:[#allocation7 + $0x48] ss:$12 sps:$4 sm:$0xff]   ;;  %v2443_v25 = vld [vmem:[#allocation7 + $0x50] ss:$12 sps:$4 sm:$0xff]  }
  0x69   :  { %1814 = vmatpush3.bf16.msra.mxu1 %v2414_v16  ;;  %v2447_v26 = vld [vmem:[#allocation7 + $0x34] ss:$12 sps:$4 sm:$0xff]   ;;  %vm2302_vm0 = vmmov 0   ;;  %v2454_v28 = vld [vmem:[#allocation7 + $0x30] ss:$12 sps:$4 sm:$0xff]   ;;  %v2484_v43 = vshrl.u32 %v168_v42, 7 }
  0x6a   :  { %356 = vmatpush1.bf16.msra.mxu0 %v2412_v15  ;;  %1815 = vmatprep.subr.bf16.mxu1 %v2883_v4  ;;  %v2456_v29 = vld [vmem:[#allocation7 + $0x38] ss:$12 sps:$4 sm:$0xff]   ;;  %v2460_v30 = vld [vmem:[#allocation7 + $0x1c] ss:$12 sps:$4 sm:$0xff]   ;;  %v2466_v32 = vld [vmem:[#allocation7 + $0x20] ss:$12 sps:$4 sm:$0xff]  }
  0x6b   :  { %357 = vmatprep.subr.bf16.mxu0 %v2419_v17  ;;  %1827 = vmatprep.mubr.msk.bf16.mxu1 %vm2302_vm0, %v2883_v4  ;;  %v2464_v31 = vld [vmem:[#allocation7 + $0x18] ss:$12 sps:$4 sm:$0xff]   ;;  %v2474_v34 = vld [vmem:[#allocation7] ss:$12 sps:$4 sm:$0xff]   ;;  %v2476_v35 = vld [vmem:[#allocation7 + $0x8] ss:$12 sps:$4 sm:$0xff]  }
  0x6c   :  { %v2470_v33 = vld [vmem:[#allocation7 + $0x4] ss:$12 sps:$4 sm:$0xff]   ;;  %v170_v44 = vsub.s32 3, %v2484_v43  ;;  %v2491_v49 = vld [vmem:[#allocation14 + $0x8] sm:$0xff]  ;;  %v215_v60 = vsub.s32 0, %v2484_v43  ;;  %vm481_vm1 = vcmask 130048  }
  0x6d   :  { %1816 = vmatpush3.bf16.msra.mxu1 %v2424_v19  ;;  %v2487_v45 = vld [vmem:[#allocation14] sm:$0xff]  ;;  %v2523_v42 = vld [vmem:[#allocation5] sm:$0xff]  ;;  %s2303_s6 = smov [#allocation16]  }
  0x6e   :  { %358 = vmatpush1.bf16.msra.mxu0 %v2422_v18  ;;  %1817 = vmatprep.subr.bf16.mxu1 %v2883_v4  ;;  %v171_v48 = vrot.slane %v2487_v45, %v170_v44  ;;  %v177_v53 = vrot.slane %v2491_v49, %v170_v44  ;;  %v2507_v63 = vrot.slane %v2491_v49, %v215_v60  ;;  %s1624_s7 = sshll.u32 %s2303_s6, 4  ;;  %s1625_s7 = int_to_ptr.vmem [resolvable:$true] %s1624_s7 }
  0x6f   :  { %359 = vmatprep.subr.bf16.mxu0 %v2429_v20  ;;  %s2254_s15 = scalar_lea.vmem %s1625_s7, 256  ;;  %p2259_p13 = scmp.lt.s32.totalorder %s1625_s7, %s1625_s7 }
  0x70   :  { %p2255_p12 = scmp.ne.s32.totalorder %s1625_s7, %s2254_s15  ;;  %p2260_p0 = scmp.lt.s32.totalorder %s2254_s15, %s2254_s15 }
  0x71   :  { %1818 = vmatpush3.bf16.msra.mxu1 %v2434_v22 }
  0x72   :  { %360 = vmatpush1.bf16.msra.mxu0 %v2432_v21  ;;  %1819 = vmatprep.subr.bf16.mxu1 %v2883_v4  ;;  %p2261_p1 = por %p2260_p0, %p2259_p13 }
  0x73   :  { %361 = vmatprep.subr.bf16.mxu0 %v2436_v23 }
  0x74   :  { %p2262_p2 = pnand %p2261_p1, %p2255_p12 }
  0x75   :  { %1820 = vmatpush3.bf16.msra.mxu1 %v2443_v25 }
  0x76   :  { %362 = vmatpush1.bf16.msra.mxu0 %v2441_v24  ;;  %1821 = vmatprep.subr.bf16.mxu1 %v2883_v4 }
  0x77   :  { %363 = vmatprep.subr.bf16.mxu0 %v2447_v26 }
  0x79   :  { %1822 = vmatpush3.bf16.msra.mxu1 %v2456_v29 }
  0x7a   :  { %364 = vmatpush1.bf16.msra.mxu0 %v2454_v28  ;;  %1823 = vmatprep.subr.bf16.mxu1 %v2883_v4 }
  0x7b   :  { %365 = vmatprep.subr.bf16.mxu0 %v2460_v30 }
  0x7d   :  { %1824 = vmatpush3.bf16.msra.mxu1 %v2466_v32 }
  0x7e   :  { %366 = vmatpush1.bf16.msra.mxu0 %v2464_v31  ;;  %1825 = vmatprep.subr.bf16.mxu1 %v2883_v4 }
  0x7f   :  { %367 = vmatprep.subr.bf16.mxu0 %v2470_v33 }
  0x81   :  { %1826 = vmatpush3.bf16.msra.mxu1 %v2476_v35 }
  0x82   :  { %368 = vmatpush1.bf16.msra.mxu0 %v2474_v34  ;;  %1831 = vmatprep.subr.bf16.mxu1 %v2883_v4 }
  0x83   :  { %1843 = vmatprep.subr.bf16.mxu0 %v2883_v4 }
  0xed   :  { %v146_v6 = vpop.xlane.xlu0 %145 }
  0xee   :  { %v150_v7 = vmul.f32 0.0078125, %v146_v6 }
  0xf0   :  { %v2402_v8 = vsub.f32 %v143_v0, %v150_v7 }
  0xf1   :  { %v148_v9 = vpop.xlane.xlu0 %147 }
  0xf2   :  { %v151_v10 = vmul.f32 0.0078125, %v148_v9  ;;  %v154_v11 = vmul.f32 %v2402_v8, %v2402_v8 }
  0xf4   :  { %v2406_v12 = vsub.f32 %v144_v1, %v151_v10  ;;  %156 = vadd.xlane.f32.xlu1 %v154_v11  ;;  %v140_v10 = vld [vmem:[#allocation14 + $0x10] sm:$0xff] }
  0xf6   :  { %v155_v13 = vmul.f32 %v2406_v12, %v2406_v12 }
  0xf8   :  { %158 = vadd.xlane.f32.xlu1 %v155_v13  ;;  %v2514_v13 = vrot.slane %v140_v10, %v215_v60  ;;  %v2540_v10 = vld [vmem:[#allocation8 + $0x28] sm:$0xff]  }
  0xf9   :  { %2920 = vst [vmem:[#allocation25_spill] sm:$0xff] %v2540_v10 }
 0x17d   :  { %v157_v36 = vpop.xlane.xlu1 %156 }
 0x17e   :  { %v160_v37 = vmul.f32 0.0078125, %v157_v36 }
 0x180   :  { %v162_v38 = vadd.f32 1e-12, %v160_v37 }
 0x181   :  { %v159_v39 = vpop.xlane.xlu1 %158 }
 0x182   :  { %2041 = vrsqrt.f32 %v162_v38  ;;  %v161_v40 = vmul.f32 0.0078125, %v159_v39 }
 0x184   :  { %v163_v41 = vadd.f32 1e-12, %v161_v40 }
 0x186   :  { %2043 = vrsqrt.f32 %v163_v41 }
 0x18f   :  { %v2042_v46 = vpop.eup %2041 }
 0x190   :  { %v166_v47 = vmul.f32 %v2042_v46, %v2402_v8 }
 0x192   :  { %v172_v52 = vmul.f32 %v171_v48, %v166_v47 }
 0x193   :  { %v2044_v50 = vpop.eup %2043 }
 0x194   :  { %v167_v51 = vmul.f32 %v2044_v50, %v2406_v12  ;;  %v2495_v55 = vadd.f32 %v177_v53, %v172_v52  ;;  %v2512_v12 = vrot.slane %v2487_v45, %v215_v60 }
 0x196   :  { %v173_v54 = vmul.f32 %v171_v48, %v167_v51  ;;  %v2526_v48 = vld [vmem:[#allocation5 + $0x8] sm:$0xff] }
 0x198   :  { %v2497_v56 = vadd.f32 %v177_v53, %v173_v54 }
 0x19a   :  { %v180_v57 = vpack.c.bf16 %v2497_v56, %v2495_v55 }
 0x19c   :  { %386 = vmatmul.mubr.bf16.vlgmr.msra.gmra.mxu0 %v180_v57  ;;  %1828 = vmatmul.mubr.bf16.vlgmr.msra.gmra.mxu1 %v180_v57 }
 0x19d   :  { %1833 = vmatprep.mubr.msk.bf16.mxu1 %vm2302_vm0, %v2883_v4  ;;  %1859 = vmatprep.mubr.msk.bf16.mxu0 %vm2302_vm0, %v2883_v4 }
 0x25c   :  { %v387_v58 = vpop.f32.mrf.mxu0  ;;  %v430_v59 = vpop.f32.mrf.mxu1 }
 0x25d   :  { %v388_v38 = vadd.f32 %v387_v58, %v2512_v12  ;;  %v431_v39 = vadd.f32 %v430_v59, %v2514_v13 }
 0x25e   :  { %v389_v61 = vpop.f32.mrf.mxu0  ;;  %v1829_v62 = vpop.f32.mrf.mxu1 }
 0x25f   :  { %v390_v8 = vadd.f32 %v389_v61, %v2507_v63 }
 0x260   :  { %v391_v0 = vpop.f32.mrf.mxu0  ;;  %v433_v1 = vpop.f32.mrf.mxu1 }
 0x261   :  { %v392_v36 = vadd.f32 %v391_v0, %v2512_v12  ;;  %v434_v37 = vadd.f32 %v433_v1, %v2514_v13 }
 0x262   :  { %v393_v6 = vpop.f32.mrf.mxu0  ;;  %v1830_v7 = vpop.f32.mrf.mxu1 }
 0x263   :  { %v394_v9 = vadd.f32 %v393_v6, %v2507_v63  ;;  %v437_v40 = vpack.c.bf16 %v392_v36, %v388_v38  ;;  %v439_v41 = vpack.c.bf16 %v434_v37, %v431_v39  ;;  %v2548_v36 = vld [vmem:[#allocation8 + $0x18] sm:$0xff]   ;;  %v2552_v37 = vld [vmem:[#allocation8 + $0x10] sm:$0xff]  }
 0x264   :  { %2922 = vst [vmem:[#allocation27_spill] sm:$0xff] %v2548_v36  ;;  %2923 = vst [vmem:[#allocation28_spill] sm:$0xff] %v2552_v37 }
 0x265   :  { %v438_v11 = vpack.c.bf16 %v394_v9, %v390_v8  ;;  %v2533_v8 = vld [vmem:[#allocation8 + $0x38] sm:$0xff]   ;;  %v2536_v9 = vld [vmem:[#allocation8 + $0x30] sm:$0xff]  }
 0x266   :  { %2918 = vst [vmem:[#allocation23_spill] sm:$0xff] %v2533_v8  ;;  %1844 = vmatpush3.bf16.msra.mxu0 %v2533_v8  ;;  %2919 = vst [vmem:[#allocation24_spill] sm:$0xff] %v2536_v9 }
 0x267   :  { %1832 = vmatpush3.bf16.xpose.msra.mxu1 %v438_v11  ;;  %1845 = vmatprep.subr.bf16.mxu0 %v2883_v4  ;;  %v2544_v11 = vld [vmem:[#allocation8 + $0x20] sm:$0xff]  }
 0x268   :  { %1837 = vmatprep.subr.bf16.mxu1 %v2883_v4  ;;  %2921 = vst [vmem:[#allocation26_spill] sm:$0xff] %v2544_v11 }
 0x26a   :  { %1846 = vmatpush3.bf16.msra.mxu0 %v2536_v9 }
 0x26b   :  { %1847 = vmatprep.subr.bf16.mxu0 %v2883_v4 }
 0x26e   :  { %1834 = vmatmul.mubr.bf16.vlgmr.msra.gmra.mxu1 %v437_v40  ;;  %1848 = vmatpush3.bf16.msra.mxu0 %v2540_v10 }
 0x26f   :  { %1838 = vmatpush3.bf16.msra.mxu1 %v439_v41  ;;  %1839 = vmatprep.mubr.msk.bf16.mxu1 %vm2302_vm0, %v2883_v4 }
 0x270   :  { %1849 = vmatprep.subr.bf16.mxu0 %v2883_v4 }
 0x272   :  { %1850 = vmatpush3.bf16.msra.mxu0 %v2544_v11 }
 0x273   :  { %1851 = vmatprep.subr.bf16.mxu0 %v2883_v4 }
 0x276   :  { %1852 = vmatpush3.bf16.msra.mxu0 %v2548_v36 }
 0x277   :  { %1853 = vmatprep.subr.bf16.mxu0 %v2883_v4 }
 0x27a   :  { %1854 = vmatpush3.bf16.msra.mxu0 %v2552_v37 }
 0x27b   :  { %1855 = vmatprep.subr.bf16.mxu0 %v2883_v4 }
 0x32e   :  { %v474_v44 = vpop.f32.mrf.mxu1 }
 0x32f   :  { %v475_v46 = vadd.f32 %v474_v44, %v2523_v42 }
 0x330   :  { %v1835_v47 = vpop.f32.mrf.mxu1 }
 0x331   :  { %v482_v50 = vsel %vm481_vm1, %v475_v46, -inf }
 0x332   :  { %483 = vmax.xlane.f32.xlu0 %v482_v50  ;;  %v477_v51 = vpop.f32.mrf.mxu1  ;;  %v2559_v50 = vld [vmem:[#allocation8 + $0x8] sm:$0xff]  }
 0x333   :  { %v478_v52 = vadd.f32 %v477_v51, %v2526_v48  ;;  %2924 = vst [vmem:[#allocation29_spill] sm:$0xff] %v2559_v50  ;;  %1856 = vmatpush3.bf16.msra.mxu0 %v2559_v50  ;;  %v2563_v51 = vld [vmem:[#allocation8] sm:$0xff]   ;;  %v685_v50 = vsub.s32 4, %v2484_v43 }
 0x334   :  { %v1836_v53 = vpop.f32.mrf.mxu1  ;;  %1857 = vmatprep.subr.bf16.mxu0 %v2883_v4  ;;  %2925 = vst [vmem:[#allocation30_spill] sm:$0xff] %v2563_v51 }
 0x335   :  { %v485_v54 = vsel %vm481_vm1, %v478_v52, -inf  ;;  %v2628_v11 = vrot.slane %v2487_v45, %v685_v50 }
 0x336   :  { %486 = vmax.xlane.f32.xlu1 %v485_v54 }
 0x337   :  { %1858 = vmatpush3.bf16.msra.mxu0 %v2563_v51  ;;  %2927 = vst [vmem:[#allocation32_spill] sm:$0xff] %v2628_v11 }
 0x3bb   :  { %v484_v57 = vpop.xlane.xlu0 %483 }
 0x3bc   :  { %v488_v58 = vsub.f32 %v475_v46, %v484_v57 }
 0x3be   :  { %v490_v59 = vmul.f32 1.442695, %v488_v58 }
 0x3bf   :  { %v487_v60 = vpop.xlane.xlu1 %486 }
 0x3c0   :  { %2045 = vpow2.f32 %v490_v59  ;;  %v489_v61 = vsub.f32 %v478_v52, %v487_v60  ;;  %v2567_v59 = vsub.s32 1, %v2484_v43 }
 0x3c2   :  { %v492_v62 = vmul.f32 1.442695, %v489_v61  ;;  %v2571_v60 = vrot.slane %v2487_v45, %v2567_v59 }
 0x3c4   :  { %2047 = vpow2.f32 %v492_v62  ;;  %2926 = vst [vmem:[#allocation31_spill] sm:$0xff] %v2571_v60 }
 0x3cd   :  { %v2046_v0 = vpop.eup %2045 }
 0x3ce   :  { %v494_v1 = vsel %vm481_vm1, %v2046_v0, 0.0 }
 0x3cf   :  { %495 = vadd.xlane.f32.xlu0 %v494_v1 }
 0x3d1   :  { %v2048_v6 = vpop.eup %2047 }
 0x3d2   :  { %v497_v7 = vsel %vm481_vm1, %v2048_v6, 0.0 }
 0x3d3   :  { %498 = vadd.xlane.f32.xlu1 %v497_v7 }
 0x458   :  { %v496_v38 = vpop.xlane.xlu0 %495 }
 0x459   :  { %2049 = vrcp.f32 %v496_v38 }
 0x45c   :  { %v499_v39 = vpop.xlane.xlu1 %498 }
 0x45d   :  { %2051 = vrcp.f32 %v499_v39 }
 0x466   :  { %v2050_v40 = vpop.eup %2049 }
 0x467   :  { %v502_v44 = vmul.f32 %v2050_v40, %v2046_v0  ;;  %v2577_v40 = vld [vmem:[#allocation10 + $0x70] ss:$8 sps:$4 sm:$0xff]  }
 0x46a   :  { %v2052_v41 = vpop.eup %2051 }
 0x46b   :  { %v503_v46 = vmul.f32 %v2052_v41, %v2048_v6  ;;  %v2579_v41 = vld [vmem:[#allocation10 + $0x74] ss:$8 sps:$4 sm:$0xff]  }
 0x46c   :  { %800 = vmatprep.subr.bf16.mxu1 %v2579_v41 }
 0x46d   :  { %v504_v47 = vpack.c.bf16 %v503_v46, %v502_v44 }
 0x46f   :  { %1840 = vmatmul.mubr.msk.bf16.vlgmr.msra.gmra.mxu1 %vm481_vm1, %v504_v47 }
 0x470   :  { %832 = vmatprep.mubr.bf16.mxu1 %v2885_v27  ;;  %801 = vmatpush1.bf16.msra.mxu1 %v2577_v40 }
 0x52f   :  { %v542_v52 = vpop.f32.mrf.mxu1 }
 0x531   :  { %v1841_v53 = vpop.f32.mrf.mxu1 }
 0x533   :  { %v545_v54 = vpop.f32.mrf.mxu1 }
 0x534   :  { %v549_v57 = vpack.c.bf16 %v545_v54, %v542_v52 }
 0x535   :  { %v1842_v58 = vpop.f32.mrf.mxu1 }
 0x536   :  { %1860 = vmatmul.mubr.bf16.vlgmr.msra.gmra.mxu0 %v549_v57  ;;  %v2585_v58 = vld [vmem:[#allocation10 + $0x60] ss:$8 sps:$4 sm:$0xff]  }
 0x5f6   :  { %v652_v61 = vpop.f32.mrf.mxu0 }
 0x5f7   :  { %v653_v62 = vadd.f32 %v652_v61, %v2571_v60  ;;  %v2589_v61 = vld [vmem:[#allocation10 + $0x54] ss:$8 sps:$4 sm:$0xff]  }
 0x5f8   :  { %v1861_v0 = vpop.f32.mrf.mxu0 }
 0x5f9   :  { %v659_v1 = vadd.f32 %v653_v62, %v2495_v55  ;;  %v2591_v62 = vld [vmem:[#allocation10 + $0x50] ss:$8 sps:$4 sm:$0xff]   ;;  %v2595_v0 = vld [vmem:[#allocation10 + $0x40] ss:$8 sps:$4 sm:$0xff]  }
 0x5fa   :  { %v655_v6 = vpop.f32.mrf.mxu0 }
 0x5fb   :  { %v656_v7 = vadd.f32 %v655_v6, %v2571_v60  ;;  %661 = vadd.xlane.f32.xlu0 %v659_v1  ;;  %v2599_v6 = vld [vmem:[#allocation10 + $0x34] ss:$8 sps:$4 sm:$0xff]  }
 0x5fc   :  { %v1862_v38 = vpop.f32.mrf.mxu0 }
 0x5fd   :  { %v660_v39 = vadd.f32 %v656_v7, %v2497_v56  ;;  %v2583_v56 = vld [vmem:[#allocation10 + $0x64] ss:$8 sps:$4 sm:$0xff]   ;;  %v2603_v7 = vld [vmem:[#allocation10 + $0x30] ss:$8 sps:$4 sm:$0xff]  }
 0x5fe   :  { %802 = vmatprep.subr.bf16.mxu1 %v2583_v56  ;;  %v2606_v38 = vld [vmem:[#allocation10 + $0x24] ss:$8 sps:$4 sm:$0xff]  }
 0x5ff   :  { %663 = vadd.xlane.f32.xlu1 %v660_v39  ;;  %803 = vmatpush1.bf16.msra.mxu1 %v2585_v58 }
 0x600   :  { %804 = vmatprep.subr.bf16.mxu1 %v2589_v61 }
 0x603   :  { %805 = vmatpush1.bf16.msra.mxu1 %v2591_v62 }
 0x684   :  { %v662_v44 = vpop.xlane.xlu0 %661 }
 0x685   :  { %v665_v46 = vmul.f32 0.0078125, %v662_v44  ;;  %v2612_v44 = vld [vmem:[#allocation10 + $0x14] ss:$8 sps:$4 sm:$0xff]  }
 0x687   :  { %v667_v47 = vsub.f32 %v659_v1, %v665_v46  ;;  %v2597_v1 = vld [vmem:[#allocation10 + $0x44] ss:$8 sps:$4 sm:$0xff]   ;;  %v2615_v46 = vld [vmem:[#allocation10 + $0x10] ss:$8 sps:$4 sm:$0xff]  }
 0x688   :  { %v664_v55 = vpop.xlane.xlu1 %663  ;;  %806 = vmatprep.subr.bf16.mxu1 %v2597_v1 }
 0x689   :  { %v666_v52 = vmul.f32 0.0078125, %v664_v55  ;;  %v669_v53 = vmul.f32 %v667_v47, %v667_v47  ;;  %807 = vmatpush1.bf16.msra.mxu1 %v2595_v0  ;;  %v2618_v55 = vld [vmem:[#allocation10 + $0x4] ss:$8 sps:$4 sm:$0xff]  }
 0x68a   :  { %808 = vmatprep.subr.bf16.mxu1 %v2599_v6 }
 0x68b   :  { %v668_v54 = vsub.f32 %v660_v39, %v666_v52  ;;  %671 = vadd.xlane.f32.xlu0 %v669_v53  ;;  %v2609_v39 = vld [vmem:[#allocation10 + $0x20] ss:$8 sps:$4 sm:$0xff]  }
 0x68c   :  { %v2621_v52 = vld [vmem:[#allocation10] ss:$8 sps:$4 sm:$0xff]  }
 0x68d   :  { %v670_v57 = vmul.f32 %v668_v54, %v668_v54  ;;  %809 = vmatpush1.bf16.msra.mxu1 %v2603_v7 }
 0x68e   :  { %810 = vmatprep.subr.bf16.mxu1 %v2606_v38 }
 0x68f   :  { %673 = vadd.xlane.f32.xlu1 %v670_v57 }
 0x691   :  { %811 = vmatpush1.bf16.msra.mxu1 %v2609_v39 }
 0x692   :  { %812 = vmatprep.subr.bf16.mxu1 %v2612_v44 }
 0x695   :  { %813 = vmatpush1.bf16.msra.mxu1 %v2615_v46 }
 0x696   :  { %814 = vmatprep.subr.bf16.mxu1 %v2618_v55 }
 0x699   :  { %815 = vmatpush1.bf16.msra.mxu1 %v2621_v52 }
 0x69a   :  { %1091 = vmatprep.subr.bf16.mxu1 %v2391_v2  ;;  %v2632_v2 = vrot.slane %v2491_v49, %v685_v50 }
 0x69c   :  { %2928 = vst [vmem:[#allocation33_spill] sm:$0xff] %v2632_v2 }
 0x714   :  { %v672_v53 = vpop.xlane.xlu0 %671 }
 0x715   :  { %v675_v57 = vmul.f32 0.0078125, %v672_v53 }
 0x717   :  { %v677_v4 = vadd.f32 1e-12, %v675_v57 }
 0x718   :  { %v674_v27 = vpop.xlane.xlu1 %673 }
 0x719   :  { %2053 = vrsqrt.f32 %v677_v4  ;;  %v676_v60 = vmul.f32 0.0078125, %v674_v27 }
 0x71b   :  { %v678_v51 = vadd.f32 1e-12, %v676_v60 }
 0x71d   :  { %2055 = vrsqrt.f32 %v678_v51 }
 0x726   :  { %v2054_v37 = vpop.eup %2053 }
 0x727   :  { %v681_v36 = vmul.f32 %v2054_v37, %v667_v47 }
 0x729   :  { %v687_v8 = vmul.f32 %v2628_v11, %v681_v36  ;;  %v714_v36 = vsub.s32 2, %v2484_v43 }
 0x72a   :  { %v2056_v10 = vpop.eup %2055 }
 0x72b   :  { %v682_v9 = vmul.f32 %v2056_v10, %v668_v54  ;;  %v2636_v4 = vadd.f32 %v2632_v2, %v687_v8  ;;  %v2929_v10 = vmov 0   ;;  %v2702_v8 = vld [vmem:[#allocation11 + $0x40] sm:$0xff]   ;;  %v2711_v50 = vrot.slane %v2487_v45, %v714_v36 }
 0x72c   :  { %2942 = vst [vmem:[#allocation45_spill] sm:$0xff] %v2702_v8  ;;  %v2714_v51 = vrot.slane %v2491_v49, %v714_v36 }
 0x72d   :  { %v688_v53 = vmul.f32 %v2628_v11, %v682_v9  ;;  %v2704_v9 = vld [vmem:[#allocation11] sm:$0xff]   ;;  %2944 = vst [vmem:[#allocation47_spill] sm:$0xff] %v2711_v50 }
 0x72e   :  { %2943 = vst [vmem:[#allocation46_spill] sm:$0xff] %v2704_v9  ;;  %2945 = vst [vmem:[#allocation48_spill] sm:$0xff] %v2714_v51 }
 0x72f   :  { %v2639_v27 = vadd.f32 %v2632_v2, %v688_v53 }
 0x731   :  { %v695_v37 = vpack.c.bf16 %v2639_v27, %v2636_v4 }
 0x733   :  { %833 = vmatmul.mubr.bf16.vlgmr.msra.gmra.mxu1 %v695_v37 }
 0x734   :  { %1092 = vmatpush1.bf16.msra.mxu1 %v2393_v3  ;;  %1123 = vmatprep.mubr.bf16.mxu1 %v2929_v10  ;;  %v2930_v3 = vmov 0.0  }
 0x735   :  { %1093 = vmatprep.subr.bf16.mxu1 %v2410_v14  ;;  %v2660_v14 = vld [vmem:[#allocation11 + $0x78] sm:$0xff]  }
 0x736   :  { %1736 = vmatprep.subr.bf16.mxu0 %v2660_v14 }
 0x738   :  { %1094 = vmatpush1.bf16.msra.mxu1 %v2412_v15  ;;  %v2662_v15 = vld [vmem:[#allocation11 + $0x38] sm:$0xff]  }
 0x739   :  { %1095 = vmatprep.subr.bf16.mxu1 %v2419_v17  ;;  %1737 = vmatpush3.bf16.msra.mxu0 %v2662_v15  ;;  %v2666_v17 = vld [vmem:[#allocation11 + $0x70] sm:$0xff]  }
 0x73a   :  { %1738 = vmatprep.subr.bf16.mxu0 %v2666_v17 }
 0x73c   :  { %1096 = vmatpush1.bf16.msra.mxu1 %v2422_v18  ;;  %v2668_v18 = vld [vmem:[#allocation11 + $0x30] sm:$0xff]  }
 0x73d   :  { %1097 = vmatprep.subr.bf16.mxu1 %v2429_v20  ;;  %2931 = vst [vmem:[#allocation34_spill] sm:$0xff] %v2668_v18  ;;  %1739 = vmatpush3.bf16.msra.mxu0 %v2668_v18  ;;  %v2672_v20 = vld [vmem:[#allocation11 + $0x68] sm:$0xff]  }
 0x73e   :  { %2932 = vst [vmem:[#allocation35_spill] sm:$0xff] %v2672_v20  ;;  %1740 = vmatprep.subr.bf16.mxu0 %v2672_v20 }
 0x740   :  { %1098 = vmatpush1.bf16.msra.mxu1 %v2432_v21  ;;  %v2674_v21 = vld [vmem:[#allocation11 + $0x28] sm:$0xff]  }
 0x741   :  { %1099 = vmatprep.subr.bf16.mxu1 %v2436_v23  ;;  %2933 = vst [vmem:[#allocation36_spill] sm:$0xff] %v2674_v21  ;;  %1741 = vmatpush3.bf16.msra.mxu0 %v2674_v21  ;;  %v2678_v23 = vld [vmem:[#allocation11 + $0x60] sm:$0xff]  }
 0x742   :  { %2934 = vst [vmem:[#allocation37_spill] sm:$0xff] %v2678_v23  ;;  %1742 = vmatprep.subr.bf16.mxu0 %v2678_v23 }
 0x744   :  { %1100 = vmatpush1.bf16.msra.mxu1 %v2441_v24  ;;  %v2680_v24 = vld [vmem:[#allocation11 + $0x20] sm:$0xff]  }
 0x745   :  { %1101 = vmatprep.subr.bf16.mxu1 %v2447_v26  ;;  %2935 = vst [vmem:[#allocation38_spill] sm:$0xff] %v2680_v24  ;;  %1743 = vmatpush3.bf16.msra.mxu0 %v2680_v24  ;;  %v2684_v26 = vld [vmem:[#allocation11 + $0x58] sm:$0xff]  }
 0x746   :  { %2936 = vst [vmem:[#allocation39_spill] sm:$0xff] %v2684_v26  ;;  %1744 = vmatprep.subr.bf16.mxu0 %v2684_v26 }
 0x748   :  { %1102 = vmatpush1.bf16.msra.mxu1 %v2454_v28  ;;  %v2686_v28 = vld [vmem:[#allocation11 + $0x18] sm:$0xff]  }
 0x749   :  { %1103 = vmatprep.subr.bf16.mxu1 %v2460_v30  ;;  %2937 = vst [vmem:[#allocation40_spill] sm:$0xff] %v2686_v28  ;;  %1745 = vmatpush3.bf16.msra.mxu0 %v2686_v28  ;;  %v2690_v30 = vld [vmem:[#allocation11 + $0x50] sm:$0xff]  }
 0x74a   :  { %2938 = vst [vmem:[#allocation41_spill] sm:$0xff] %v2690_v30  ;;  %1746 = vmatprep.subr.bf16.mxu0 %v2690_v30 }
 0x74c   :  { %1104 = vmatpush1.bf16.msra.mxu1 %v2464_v31  ;;  %v2692_v31 = vld [vmem:[#allocation11 + $0x10] sm:$0xff]  }
 0x74d   :  { %1105 = vmatprep.subr.bf16.mxu1 %v2470_v33  ;;  %2939 = vst [vmem:[#allocation42_spill] sm:$0xff] %v2692_v31  ;;  %1747 = vmatpush3.bf16.msra.mxu0 %v2692_v31  ;;  %v2696_v33 = vld [vmem:[#allocation11 + $0x48] sm:$0xff]  }
 0x74e   :  { %2940 = vst [vmem:[#allocation43_spill] sm:$0xff] %v2696_v33  ;;  %1748 = vmatprep.subr.bf16.mxu0 %v2696_v33 }
 0x750   :  { %1106 = vmatpush1.bf16.msra.mxu1 %v2474_v34  ;;  %v2698_v34 = vld [vmem:[#allocation11 + $0x8] sm:$0xff]  }
 0x751   :  { %1883 = vmatprep.subr.bf16.mxu1 %v2930_v3  ;;  %2941 = vst [vmem:[#allocation44_spill] sm:$0xff] %v2698_v34  ;;  %1749 = vmatpush3.bf16.msra.mxu0 %v2698_v34 }
 0x752   :  { %1750 = vmatprep.subr.bf16.mxu0 %v2702_v8 }
 0x755   :  { %1751 = vmatpush3.bf16.msra.mxu0 %v2704_v9 }
 0x756   :  { %1863 = vmatprep.subr.bf16.mxu0 %v2930_v3 }
 0x7f3   :  { %v834_v60 = vpop.f32.mrf.mxu1 }
 0x7f4   :  { %v835_v47 = vadd.f32 %v834_v60, %v2711_v50 }
 0x7f5   :  { %v836_v54 = vpop.f32.mrf.mxu1 }
 0x7f6   :  { %v843_v57 = vmul.f32 %v835_v47, %v835_v47  ;;  %v837_v53 = vadd.f32 %v836_v54, %v2714_v51 }
 0x7f7   :  { %v838_v37 = vpop.f32.mrf.mxu1 }
 0x7f8   :  { %v847_v2 = vmul.f32 %v843_v57, %v835_v47  ;;  %v844_v11 = vmul.f32 %v837_v53, %v837_v53  ;;  %v839_v9 = vadd.f32 %v838_v37, %v2711_v50 }
 0x7f9   :  { %v840_v8 = vpop.f32.mrf.mxu1 }
 0x7fa   :  { %v851_v34 = vmul.f32 0.044715, %v847_v2  ;;  %v848_v33 = vmul.f32 %v844_v11, %v837_v53  ;;  %v845_v31 = vmul.f32 %v839_v9, %v839_v9  ;;  %v841_v30 = vadd.f32 %v840_v8, %v2714_v51 }
 0x7fc   :  { %v855_v36 = vadd.f32 %v851_v34, %v835_v47  ;;  %v852_v28 = vmul.f32 0.044715, %v848_v33  ;;  %v849_v26 = vmul.f32 %v845_v31, %v839_v9  ;;  %v846_v24 = vmul.f32 %v841_v30, %v841_v30 }
 0x7fe   :  { %v859_v60 = vmul.f32 0.7978846, %v855_v36  ;;  %v856_v23 = vadd.f32 %v852_v28, %v837_v53  ;;  %v853_v21 = vmul.f32 0.044715, %v849_v26  ;;  %v850_v20 = vmul.f32 %v846_v24, %v841_v30 }
 0x800   :  { %v860_v54 = vmul.f32 0.7978846, %v856_v23  ;;  %v857_v18 = vadd.f32 %v853_v21, %v839_v9  ;;  %v854_v57 = vmul.f32 0.044715, %v850_v20  ;;  %2057 = vtanh.f32 %v859_v60 }
 0x802   :  { %2059 = vtanh.f32 %v860_v54  ;;  %v861_v37 = vmul.f32 0.7978846, %v857_v18  ;;  %v858_v50 = vadd.f32 %v854_v57, %v841_v30 }
 0x804   :  { %2061 = vtanh.f32 %v861_v37  ;;  %v862_v11 = vmul.f32 0.7978846, %v858_v50 }
 0x806   :  { %2063 = vtanh.f32 %v862_v11 }
 0x80d   :  { %v2058_v2 = vpop.eup %2057 }
 0x80e   :  { %v867_v31 = vadd.f32 1.0, %v2058_v2 }
 0x80f   :  { %v2060_v8 = vpop.eup %2059 }
 0x810   :  { %v868_v34 = vadd.f32 1.0, %v2060_v8  ;;  %v871_v23 = vmul.f32 0.5, %v867_v31 }
 0x811   :  { %v2062_v33 = vpop.eup %2061 }
 0x812   :  { %v869_v51 = vadd.f32 1.0, %v2062_v33  ;;  %v872_v24 = vmul.f32 0.5, %v868_v34  ;;  %v875_v18 = vmul.f32 %v871_v23, %v835_v47 }
 0x813   :  { %v2064_v36 = vpop.eup %2063 }
 0x814   :  { %v873_v28 = vmul.f32 0.5, %v869_v51  ;;  %v870_v26 = vadd.f32 1.0, %v2064_v36  ;;  %v876_v60 = vmul.f32 %v872_v24, %v837_v53 }
 0x816   :  { %v874_v21 = vmul.f32 0.5, %v870_v26  ;;  %v877_v20 = vmul.f32 %v873_v28, %v839_v9 }
 0x818   :  { %v878_v54 = vmul.f32 %v874_v21, %v841_v30  ;;  %v879_v37 = vpack.c.bf16 %v877_v20, %v875_v18 }
 0x81a   :  { %v880_v57 = vpack.c.bf16 %v878_v54, %v876_v60 }
 0x81c   :  { %1045 = vmatprep.mubr.bf16.mxu0 %v880_v57 }
 0x81d   :  { %1046 = vmatmul.mubr.bf16.vlgmr.msra.gmra.mxu0 %v879_v37 }
 0x81e   :  { %1864 = vmatpush3.bf16.msra.mxu0 %v2396_v5  ;;  %1879 = vmatprep.mubr.msk.bf16.mxu0 %vm2302_vm0, %v2930_v3 }
 0x81f   :  { %1865 = vmatprep.subr.bf16.mxu0 %v2930_v3 }
 0x822   :  { %1866 = vmatpush3.bf16.msra.mxu0 %v2414_v16  ;;  %v2740_v16 = vrot.slane %v2491_v49, %v2567_v59 }
 0x823   :  { %1867 = vmatprep.subr.bf16.mxu0 %v2930_v3 }
 0x826   :  { %1868 = vmatpush3.bf16.msra.mxu0 %v2424_v19 }
 0x827   :  { %1869 = vmatprep.subr.bf16.mxu0 %v2930_v3 }
 0x82a   :  { %1870 = vmatpush3.bf16.msra.mxu0 %v2434_v22 }
 0x82b   :  { %1871 = vmatprep.subr.bf16.mxu0 %v2930_v3 }
 0x82e   :  { %1872 = vmatpush3.bf16.msra.mxu0 %v2443_v25 }
 0x82f   :  { %1873 = vmatprep.subr.bf16.mxu0 %v2930_v3 }
 0x832   :  { %1874 = vmatpush3.bf16.msra.mxu0 %v2456_v29 }
 0x833   :  { %1875 = vmatprep.subr.bf16.mxu0 %v2930_v3 }
 0x836   :  { %1876 = vmatpush3.bf16.msra.mxu0 %v2466_v32 }
 0x837   :  { %1877 = vmatprep.subr.bf16.mxu0 %v2930_v3 }
 0x83a   :  { %1878 = vmatpush3.bf16.msra.mxu0 %v2476_v35 }
 0x83b   :  { %1357 = vmatprep.subr.bf16.mxu0 %v2579_v41 }
 0x8dd   :  { %v1752_v5 = vpop.f32.mrf.mxu0 }
 0x8df   :  { %v1753_v19 = vpop.f32.mrf.mxu0 }
 0x8e0   :  { %v1754_v22 = vadd.f32 %v1753_v19, %v1752_v5 }
 0x8e1   :  { %v1755_v25 = vpop.f32.mrf.mxu0 }
 0x8e2   :  { %v1048_v29 = vadd.f32 %v1754_v22, %v2740_v16 }
 0x8e3   :  { %v1756_v30 = vpop.f32.mrf.mxu0 }
 0x8e4   :  { %v1757_v9 = vadd.f32 %v1756_v30, %v1755_v25  ;;  %v1054_v32 = vadd.f32 %v1048_v29, %v2636_v4 }
 0x8e6   :  { %v1051_v50 = vadd.f32 %v1757_v9, %v2740_v16  ;;  %1056 = vadd.xlane.f32.xlu0 %v1054_v32 }
 0x8e8   :  { %v1055_v35 = vadd.f32 %v1051_v50, %v2639_v27  ;;  %v1080_v27 = vsub.s32 5, %v2484_v43 }
 0x8ea   :  { %1058 = vadd.xlane.f32.xlu1 %v1055_v35  ;;  %v2748_v21 = vrot.slane %v2487_v45, %v1080_v27  ;;  %v2752_v18 = vrot.slane %v2491_v49, %v1080_v27  ;;  %v2950_v27 = vld [vmem:[#allocation27_spill] sm:$0xff] }
 0x96f   :  { %v1057_v41 = vpop.xlane.xlu0 %1056 }
 0x970   :  { %v1060_v51 = vmul.f32 0.0078125, %v1057_v41 }
 0x972   :  { %v1062_v47 = vsub.f32 %v1054_v32, %v1060_v51 }
 0x973   :  { %v1059_v53 = vpop.xlane.xlu1 %1058 }
 0x974   :  { %v1061_v11 = vmul.f32 0.0078125, %v1059_v53  ;;  %v1064_v2 = vmul.f32 %v1062_v47, %v1062_v47 }
 0x976   :  { %v1063_v8 = vsub.f32 %v1055_v35, %v1061_v11  ;;  %1066 = vadd.xlane.f32.xlu0 %v1064_v2 }
 0x978   :  { %v1065_v34 = vmul.f32 %v1063_v8, %v1063_v8 }
 0x97a   :  { %1068 = vadd.xlane.f32.xlu1 %v1065_v34 }
 0x9ff   :  { %v1067_v33 = vpop.xlane.xlu0 %1066 }
 0xa00   :  { %v1070_v31 = vmul.f32 0.0078125, %v1067_v33 }
 0xa02   :  { %v1072_v36 = vadd.f32 1e-12, %v1070_v31 }
 0xa03   :  { %v1069_v4 = vpop.xlane.xlu1 %1068 }
 0xa04   :  { %2065 = vrsqrt.f32 %v1072_v36  ;;  %v1071_v28 = vmul.f32 0.0078125, %v1069_v4  ;;  %v2946_v36 = vld [vmem:[#allocation23_spill] sm:$0xff]  ;;  %v2947_v4 = vld [vmem:[#allocation24_spill] sm:$0xff] }
 0xa06   :  { %v1073_v26 = vadd.f32 1e-12, %v1071_v28  ;;  %v2948_v28 = vld [vmem:[#allocation25_spill] sm:$0xff] }
 0xa08   :  { %2067 = vrsqrt.f32 %v1073_v26  ;;  %v2949_v26 = vld [vmem:[#allocation26_spill] sm:$0xff] }
 0xa11   :  { %v2066_v24 = vpop.eup %2065 }
 0xa12   :  { %v1076_v23 = vmul.f32 %v2066_v24, %v1062_v47  ;;  %v2951_v24 = vld [vmem:[#allocation28_spill] sm:$0xff] }
 0xa14   :  { %v1082_v54 = vmul.f32 %v2748_v21, %v1076_v23  ;;  %v2952_v23 = vld [vmem:[#allocation29_spill] sm:$0xff] }
 0xa15   :  { %v2068_v20 = vpop.eup %2067 }
 0xa16   :  { %v1077_v60 = vmul.f32 %v2068_v20, %v1063_v8  ;;  %v2756_v37 = vadd.f32 %v2752_v18, %v1082_v54  ;;  %v2953_v20 = vld [vmem:[#allocation30_spill] sm:$0xff] }
 0xa18   :  { %v1083_v57 = vmul.f32 %v2748_v21, %v1077_v60 }
 0xa1a   :  { %v2759_v5 = vadd.f32 %v2752_v18, %v1083_v57 }
 0xa1c   :  { %v1090_v43 = vpack.c.bf16 %v2759_v5, %v2756_v37 }
 0xa1e   :  { %1124 = vmatmul.mubr.bf16.vlgmr.msra.gmra.mxu1 %v1090_v43  ;;  %1880 = vmatmul.mubr.bf16.vlgmr.msra.gmra.mxu0 %v1090_v43 }
 0xa1f   :  { %1885 = vmatprep.mubr.msk.bf16.mxu1 %vm2302_vm0, %v2930_v3  ;;  %1358 = vmatpush1.bf16.msra.mxu0 %v2577_v40 }
 0xa20   :  { %1359 = vmatprep.subr.bf16.mxu0 %v2583_v56  ;;  %1389 = vmatprep.mubr.bf16.mxu0 %v2929_v10 }
 0xa23   :  { %1360 = vmatpush1.bf16.msra.mxu0 %v2585_v58 }
 0xa24   :  { %1361 = vmatprep.subr.bf16.mxu0 %v2589_v61 }
 0xa27   :  { %1362 = vmatpush1.bf16.msra.mxu0 %v2591_v62 }
 0xa28   :  { %1363 = vmatprep.subr.bf16.mxu0 %v2597_v1 }
 0xa2b   :  { %1364 = vmatpush1.bf16.msra.mxu0 %v2595_v0 }
 0xa2c   :  { %1365 = vmatprep.subr.bf16.mxu0 %v2599_v6 }
 0xa2f   :  { %1366 = vmatpush1.bf16.msra.mxu0 %v2603_v7 }
 0xa30   :  { %1367 = vmatprep.subr.bf16.mxu0 %v2606_v38 }
 0xa33   :  { %1368 = vmatpush1.bf16.msra.mxu0 %v2609_v39 }
 0xa34   :  { %1369 = vmatprep.subr.bf16.mxu0 %v2612_v44 }
 0xa37   :  { %1370 = vmatpush1.bf16.msra.mxu0 %v2615_v46 }
 0xa38   :  { %1371 = vmatprep.subr.bf16.mxu0 %v2618_v55 }
 0xa3b   :  { %1372 = vmatpush1.bf16.msra.mxu0 %v2621_v52 }
 0xa3c   :  { %1915 = vmatprep.subr.bf16.mxu0 %v2930_v3 }
 0xade   :  { %v1125_v45 = vpop.f32.mrf.mxu1  ;;  %v1168_v49 = vpop.f32.mrf.mxu0 }
 0xadf   :  { %v1126_v44 = vadd.f32 %v1125_v45, %v2512_v12  ;;  %v1169_v46 = vadd.f32 %v1168_v49, %v2514_v13  ;;  %v2954_v49 = vld [vmem:[#allocation34_spill] sm:$0xff] }
 0xae0   :  { %v1127_v40 = vpop.f32.mrf.mxu1  ;;  %v1881_v56 = vpop.f32.mrf.mxu0 }
 0xae1   :  { %v1128_v1 = vadd.f32 %v1127_v40, %v2507_v63  ;;  %v2955_v40 = vld [vmem:[#allocation35_spill] sm:$0xff]  ;;  %v2956_v56 = vld [vmem:[#allocation36_spill] sm:$0xff] }
 0xae2   :  { %v1129_v58 = vpop.f32.mrf.mxu1  ;;  %v1171_v61 = vpop.f32.mrf.mxu0 }
 0xae3   :  { %v1130_v38 = vadd.f32 %v1129_v58, %v2512_v12  ;;  %v1172_v39 = vadd.f32 %v1171_v61, %v2514_v13  ;;  %v2957_v58 = vld [vmem:[#allocation37_spill] sm:$0xff]  ;;  %v2958_v61 = vld [vmem:[#allocation38_spill] sm:$0xff] }
 0xae4   :  { %v1131_v62 = vpop.f32.mrf.mxu1  ;;  %v1882_v0 = vpop.f32.mrf.mxu0 }
 0xae5   :  { %v1132_v6 = vadd.f32 %v1131_v62, %v2507_v63  ;;  %v1175_v55 = vpack.c.bf16 %v1130_v38, %v1126_v44  ;;  %v1177_v52 = vpack.c.bf16 %v1172_v39, %v1169_v46  ;;  %v2960_v62 = vld [vmem:[#allocation40_spill] sm:$0xff]  ;;  %v2961_v0 = vld [vmem:[#allocation41_spill] sm:$0xff]  ;;  %v2967_v39 = vld [vmem:[#allocation31_spill] sm:$0xff] }
 0xae7   :  { %v1176_v7 = vpack.c.bf16 %v1132_v6, %v1128_v1  ;;  %v2962_v1 = vld [vmem:[#allocation42_spill] sm:$0xff]  ;;  %v2965_v6 = vld [vmem:[#allocation45_spill] sm:$0xff] }
 0xae9   :  { %1884 = vmatpush3.bf16.xpose.msra.mxu1 %v1176_v7  ;;  %v2966_v7 = vld [vmem:[#allocation46_spill] sm:$0xff] }
 0xaea   :  { %1889 = vmatprep.subr.bf16.mxu1 %v2930_v3 }
 0xaf0   :  { %1886 = vmatmul.mubr.bf16.vlgmr.msra.gmra.mxu1 %v1175_v55 }
 0xaf1   :  { %1890 = vmatpush3.bf16.msra.mxu1 %v1177_v52  ;;  %1891 = vmatprep.mubr.msk.bf16.mxu1 %vm2302_vm0, %v2930_v3 }
 0xaf2   :  { %1895 = vmatprep.subr.bf16.mxu1 %v2930_v3 }
 0xbb0   :  { %v1212_v63 = vpop.f32.mrf.mxu1 }
 0xbb1   :  { %v1213_v10 = vadd.f32 %v1212_v63, %v2523_v42 }
 0xbb2   :  { %v1887_v19 = vpop.f32.mrf.mxu1 }
 0xbb3   :  { %v1219_v22 = vsel %vm481_vm1, %v1213_v10, -inf }
 0xbb4   :  { %1220 = vmax.xlane.f32.xlu0 %v1219_v22  ;;  %v1215_v25 = vpop.f32.mrf.mxu1 }
 0xbb5   :  { %v1216_v12 = vadd.f32 %v1215_v25, %v2526_v48 }
 0xbb6   :  { %v1888_v13 = vpop.f32.mrf.mxu1 }
 0xbb7   :  { %v1222_v29 = vsel %vm481_vm1, %v1216_v12, -inf }
 0xbb8   :  { %1223 = vmax.xlane.f32.xlu1 %v1222_v29 }
 0xc3d   :  { %v1221_v30 = vpop.xlane.xlu0 %1220 }
 0xc3e   :  { %v1225_v9 = vsub.f32 %v1213_v10, %v1221_v30 }
 0xc40   :  { %v1227_v32 = vmul.f32 1.442695, %v1225_v9 }
 0xc41   :  { %v1224_v50 = vpop.xlane.xlu1 %1223 }
 0xc42   :  { %2069 = vpow2.f32 %v1227_v32  ;;  %v1226_v35 = vsub.f32 %v1216_v12, %v1224_v50 }
 0xc44   :  { %v1229_v41 = vmul.f32 1.442695, %v1226_v35 }
 0xc46   :  { %2071 = vpow2.f32 %v1229_v41 }
 0xc4f   :  { %v2070_v42 = vpop.eup %2069 }
 0xc50   :  { %v1231_v51 = vsel %vm481_vm1, %v2070_v42, 0.0 }
 0xc51   :  { %1232 = vadd.xlane.f32.xlu0 %v1231_v51 }
 0xc53   :  { %v2072_v47 = vpop.eup %2071 }
 0xc54   :  { %v1234_v53 = vsel %vm481_vm1, %v2072_v47, 0.0 }
 0xc55   :  { %1235 = vadd.xlane.f32.xlu1 %v1234_v53 }
 0xcda   :  { %v1233_v48 = vpop.xlane.xlu0 %1232 }
 0xcdb   :  { %2073 = vrcp.f32 %v1233_v48 }
 0xcde   :  { %v1236_v11 = vpop.xlane.xlu1 %1235 }
 0xcdf   :  { %2075 = vrcp.f32 %v1236_v11  ;;  %v2968_v11 = vld [vmem:[#allocation32_spill] sm:$0xff] }
 0xce8   :  { %v2074_v2 = vpop.eup %2073 }
 0xce9   :  { %v1239_v34 = vmul.f32 %v2074_v2, %v2070_v42 }
 0xcec   :  { %v2076_v8 = vpop.eup %2075 }
 0xced   :  { %v1240_v33 = vmul.f32 %v2076_v8, %v2072_v47 }
 0xcef   :  { %v1241_v31 = vpack.c.bf16 %v1240_v33, %v1239_v34  ;;  %v2969_v34 = vld [vmem:[#allocation33_spill] sm:$0xff] }
 0xcf1   :  { %1892 = vmatmul.mubr.msk.bf16.vlgmr.msra.gmra.mxu1 %vm481_vm1, %v1241_v31 }
 0xcf2   :  { %1896 = vmatpush3.bf16.msra.mxu1 %v2946_v36  ;;  %1911 = vmatprep.mubr.msk.bf16.mxu1 %vm2302_vm0, %v2930_v3 }
 0xcf3   :  { %1897 = vmatprep.subr.bf16.mxu1 %v2930_v3 }
 0xcf6   :  { %1898 = vmatpush3.bf16.msra.mxu1 %v2947_v4 }
 0xcf7   :  { %1899 = vmatprep.subr.bf16.mxu1 %v2930_v3 }
 0xcfa   :  { %1900 = vmatpush3.bf16.msra.mxu1 %v2948_v28  ;;  %v2970_v28 = vld [vmem:[#allocation47_spill] sm:$0xff] }
 0xcfb   :  { %1901 = vmatprep.subr.bf16.mxu1 %v2930_v3 }
 0xcfe   :  { %1902 = vmatpush3.bf16.msra.mxu1 %v2949_v26 }
 0xcff   :  { %1903 = vmatprep.subr.bf16.mxu1 %v2930_v3 }
 0xd02   :  { %1904 = vmatpush3.bf16.msra.mxu1 %v2950_v27 }
 0xd03   :  { %1905 = vmatprep.subr.bf16.mxu1 %v2930_v3 }
 0xd06   :  { %1906 = vmatpush3.bf16.msra.mxu1 %v2951_v24 }
 0xd07   :  { %1907 = vmatprep.subr.bf16.mxu1 %v2930_v3 }
 0xd0a   :  { %1908 = vmatpush3.bf16.msra.mxu1 %v2952_v23  ;;  %v2971_v23 = vld [vmem:[#allocation48_spill] sm:$0xff] }
 0xd0b   :  { %1909 = vmatprep.subr.bf16.mxu1 %v2930_v3 }
 0xd0e   :  { %1910 = vmatpush3.bf16.msra.mxu1 %v2953_v20 }
 0xd0f   :  { %1780 = vmatprep.subr.bf16.mxu1 %v2660_v14  ;;  %v2959_v14 = vld [vmem:[#allocation39_spill] sm:$0xff] }
 0xdb1   :  { %v1279_v60 = vpop.f32.mrf.mxu1 }
 0xdb3   :  { %v1893_v54 = vpop.f32.mrf.mxu1 }
 0xdb5   :  { %v1282_v57 = vpop.f32.mrf.mxu1 }
 0xdb6   :  { %v1286_v43 = vpack.c.bf16 %v1282_v57, %v1279_v60 }
 0xdb7   :  { %v1894_v45 = vpop.f32.mrf.mxu1 }
 0xdb8   :  { %1912 = vmatmul.mubr.bf16.vlgmr.msra.gmra.mxu1 %v1286_v43 }
 0xdb9   :  { %1781 = vmatpush3.bf16.msra.mxu1 %v2662_v15  ;;  %v2963_v15 = vld [vmem:[#allocation43_spill] sm:$0xff] }
 0xdba   :  { %1782 = vmatprep.subr.bf16.mxu1 %v2666_v17  ;;  %v2964_v17 = vld [vmem:[#allocation44_spill] sm:$0xff] }
 0xdbd   :  { %1783 = vmatpush3.bf16.msra.mxu1 %v2954_v49 }
 0xdbe   :  { %1784 = vmatprep.subr.bf16.mxu1 %v2955_v40 }
 0xdc1   :  { %1785 = vmatpush3.bf16.msra.mxu1 %v2956_v56 }
 0xdc2   :  { %1786 = vmatprep.subr.bf16.mxu1 %v2957_v58 }
 0xdc5   :  { %1787 = vmatpush3.bf16.msra.mxu1 %v2958_v61 }
 0xdc6   :  { %1788 = vmatprep.subr.bf16.mxu1 %v2959_v14 }
 0xdc9   :  { %1789 = vmatpush3.bf16.msra.mxu1 %v2960_v62 }
 0xdca   :  { %1790 = vmatprep.subr.bf16.mxu1 %v2961_v0 }
 0xdcd   :  { %1791 = vmatpush3.bf16.msra.mxu1 %v2962_v1 }
 0xdce   :  { %1792 = vmatprep.subr.bf16.mxu1 %v2963_v15 }
 0xdd1   :  { %1793 = vmatpush3.bf16.msra.mxu1 %v2964_v17 }
 0xdd2   :  { %1794 = vmatprep.subr.bf16.mxu1 %v2965_v6 }
 0xdd5   :  { %1795 = vmatpush3.bf16.msra.mxu1 %v2966_v7 }
 0xe78   :  { %v1321_v38 = vpop.f32.mrf.mxu1 }
 0xe79   :  { %v1322_v44 = vadd.f32 %v1321_v38, %v2967_v39 }
 0xe7a   :  { %v1913_v46 = vpop.f32.mrf.mxu1 }
 0xe7b   :  { %v1328_v55 = vadd.f32 %v1322_v44, %v2756_v37 }
 0xe7c   :  { %v1324_v52 = vpop.f32.mrf.mxu1 }
 0xe7d   :  { %v1325_v63 = vadd.f32 %v1324_v52, %v2967_v39  ;;  %1330 = vadd.xlane.f32.xlu0 %v1328_v55 }
 0xe7e   :  { %v1914_v10 = vpop.f32.mrf.mxu1 }
 0xe7f   :  { %v1329_v19 = vadd.f32 %v1325_v63, %v2759_v5 }
 0xe81   :  { %1332 = vadd.xlane.f32.xlu1 %v1329_v19 }
 0xf06   :  { %v1331_v22 = vpop.xlane.xlu0 %1330 }
 0xf07   :  { %v1334_v25 = vmul.f32 0.0078125, %v1331_v22 }
 0xf09   :  { %v1336_v12 = vsub.f32 %v1328_v55, %v1334_v25 }
 0xf0a   :  { %v1333_v13 = vpop.xlane.xlu1 %1332 }
 0xf0b   :  { %v1335_v29 = vmul.f32 0.0078125, %v1333_v13  ;;  %v1338_v30 = vmul.f32 %v1336_v12, %v1336_v12 }
 0xf0d   :  { %v1337_v9 = vsub.f32 %v1329_v19, %v1335_v29  ;;  %1340 = vadd.xlane.f32.xlu0 %v1338_v30 }
 0xf0f   :  { %v1339_v32 = vmul.f32 %v1337_v9, %v1337_v9 }
 0xf11   :  { %1342 = vadd.xlane.f32.xlu1 %v1339_v32 }
 0xf96   :  { %v1341_v50 = vpop.xlane.xlu0 %1340 }
 0xf97   :  { %v1344_v37 = vmul.f32 0.0078125, %v1341_v50 }
 0xf99   :  { %v1346_v35 = vadd.f32 1e-12, %v1344_v37 }
 0xf9a   :  { %v1343_v41 = vpop.xlane.xlu1 %1342 }
 0xf9b   :  { %2077 = vrsqrt.f32 %v1346_v35  ;;  %v1345_v42 = vmul.f32 0.0078125, %v1343_v41 }
 0xf9d   :  { %v1347_v51 = vadd.f32 1e-12, %v1345_v42 }
 0xf9f   :  { %2079 = vrsqrt.f32 %v1347_v51 }
 0xfa8   :  { %v2078_v5 = vpop.eup %2077 }
 0xfa9   :  { %v1350_v47 = vmul.f32 %v2078_v5, %v1336_v12 }
 0xfab   :  { %v1352_v2 = vmul.f32 %v1350_v47, %v2968_v11 }
 0xfac   :  { %v2080_v53 = vpop.eup %2079 }
 0xfad   :  { %v1351_v48 = vmul.f32 %v2080_v53, %v1337_v9  ;;  %v2839_v33 = vadd.f32 %v1352_v2, %v2969_v34 }
 0xfaf   :  { %v1353_v8 = vmul.f32 %v1351_v48, %v2968_v11 }
 0xfb1   :  { %v2842_v31 = vadd.f32 %v1353_v8, %v2969_v34 }
 0xfb3   :  { %v1356_v36 = vpack.c.bf16 %v2842_v31, %v2839_v33 }
 0xfb5   :  { %1390 = vmatmul.mubr.bf16.vlgmr.msra.gmra.mxu0 %v1356_v36 }
 0xfb6   :  { %1931 = vmatprep.mubr.msk.bf16.mxu0 %vm2302_vm0, %v2930_v3 }
0x1075   :  { %v1391_v4 = vpop.f32.mrf.mxu0 }
0x1076   :  { %v1392_v26 = vadd.f32 %v1391_v4, %v2970_v28 }
0x1077   :  { %v1393_v27 = vpop.f32.mrf.mxu0 }
0x1078   :  { %v1400_v24 = vmul.f32 %v1392_v26, %v1392_v26  ;;  %v1394_v20 = vadd.f32 %v1393_v27, %v2971_v23 }
0x1079   :  { %v1395_v60 = vpop.f32.mrf.mxu0 }
0x107a   :  { %v1404_v54 = vmul.f32 %v1400_v24, %v1392_v26  ;;  %v1401_v57 = vmul.f32 %v1394_v20, %v1394_v20  ;;  %v1396_v43 = vadd.f32 %v1395_v60, %v2970_v28  ;;  %v2033_v28 = vld [vmem:[#allocation13 + $0x38] sm:$0xff]  }
0x107b   :  { %v1397_v45 = vpop.f32.mrf.mxu0  ;;  %1916 = vmatpush3.bf16.msra.mxu0 %v2033_v28 }
0x107c   :  { %v1408_v49 = vmul.f32 0.044715, %v1404_v54  ;;  %v1405_v40 = vmul.f32 %v1401_v57, %v1394_v20  ;;  %v1402_v56 = vmul.f32 %v1396_v43, %v1396_v43  ;;  %v1398_v58 = vadd.f32 %v1397_v45, %v2971_v23  ;;  %1917 = vmatprep.subr.bf16.mxu0 %v2930_v3  ;;  %v2038_v45 = vld [vmem:[#allocation13 + $0x10] sm:$0xff]  }
0x107e   :  { %v1412_v61 = vadd.f32 %v1408_v49, %v1392_v26  ;;  %v1409_v14 = vmul.f32 0.044715, %v1405_v40  ;;  %v1406_v62 = vmul.f32 %v1402_v56, %v1396_v43  ;;  %v1403_v0 = vmul.f32 %v1398_v58, %v1398_v58  ;;  %v2039_v49 = vld [vmem:[#allocation13 + $0x8] sm:$0xff]   ;;  %v2040_v40 = vld [vmem:[#allocation13] sm:$0xff]  }
0x1080   :  { %v1416_v1 = vmul.f32 0.7978846, %v1412_v61  ;;  %v1413_v15 = vadd.f32 %v1409_v14, %v1394_v20  ;;  %v1410_v17 = vmul.f32 0.044715, %v1406_v62  ;;  %v1407_v6 = vmul.f32 %v1403_v0, %v1398_v58 }
0x1082   :  { %v1417_v7 = vmul.f32 0.7978846, %v1413_v15  ;;  %v1414_v38 = vadd.f32 %v1410_v17, %v1396_v43  ;;  %v1411_v39 = vmul.f32 0.044715, %v1407_v6  ;;  %2081 = vtanh.f32 %v1416_v1 }
0x1084   :  { %2083 = vtanh.f32 %v1417_v7  ;;  %v1418_v44 = vmul.f32 0.7978846, %v1414_v38  ;;  %v1415_v46 = vadd.f32 %v1411_v39, %v1398_v58 }
0x1086   :  { %2085 = vtanh.f32 %v1418_v44  ;;  %v1419_v55 = vmul.f32 0.7978846, %v1415_v46  ;;  %v2093_v46 = vld [vmem:[#allocation14 + $0x10] sm:$0xff] }
0x1088   :  { %2087 = vtanh.f32 %v1419_v55  ;;  %v1527_v55 = vrot.slane %v2093_v46, %v2567_v59 }
0x108f   :  { %v2082_v52 = vpop.eup %2081 }
0x1090   :  { %v1424_v22 = vadd.f32 1.0, %v2082_v52 }
0x1091   :  { %v2084_v63 = vpop.eup %2083 }
0x1092   :  { %v1425_v10 = vadd.f32 1.0, %v2084_v63  ;;  %v1428_v9 = vmul.f32 0.5, %v1424_v22 }
0x1093   :  { %v2086_v19 = vpop.eup %2085 }
0x1094   :  { %v1426_v25 = vadd.f32 1.0, %v2086_v19  ;;  %v1429_v30 = vmul.f32 0.5, %v1425_v10  ;;  %v1432_v41 = vmul.f32 %v1428_v9, %v1392_v26 }
0x1095   :  { %v2088_v12 = vpop.eup %2087 }
0x1096   :  { %v1430_v13 = vmul.f32 0.5, %v1426_v25  ;;  %v1427_v29 = vadd.f32 1.0, %v2088_v12  ;;  %v1433_v37 = vmul.f32 %v1429_v30, %v1394_v20 }
0x1098   :  { %v1431_v32 = vmul.f32 0.5, %v1427_v29  ;;  %v1434_v50 = vmul.f32 %v1430_v13, %v1396_v43  ;;  %v2037_v43 = vld [vmem:[#allocation13 + $0x18] sm:$0xff]  }
0x109a   :  { %v1435_v35 = vmul.f32 %v1431_v32, %v1398_v58  ;;  %v1436_v51 = vpack.c.bf16 %v1434_v50, %v1432_v41 }
0x109c   :  { %v1437_v42 = vpack.c.bf16 %v1435_v35, %v1433_v37 }
0x109e   :  { %1470 = vmatprep.mubr.bf16.mxu1 %v1437_v42 }
0x109f   :  { %1471 = vmatmul.mubr.bf16.vlgmr.msra.gmra.mxu1 %v1436_v51 }
0x115f   :  { %v1796_v5 = vpop.f32.mrf.mxu1 }
0x1161   :  { %v1797_v47 = vpop.f32.mrf.mxu1 }
0x1162   :  { %v1798_v53 = vadd.f32 %v1797_v47, %v1796_v5 }
0x1163   :  { %v1799_v48 = vpop.f32.mrf.mxu1 }
0x1164   :  { %v1473_v11 = vadd.f32 %v1798_v53, %v2740_v16 }
0x1165   :  { %v1800_v2 = vpop.f32.mrf.mxu1 }
0x1166   :  { %v1801_v8 = vadd.f32 %v1800_v2, %v1799_v48  ;;  %v1479_v34 = vadd.f32 %v1473_v11, %v2839_v33  ;;  %v2034_v33 = vld [vmem:[#allocation13 + $0x30] sm:$0xff]  }
0x1167   :  { %1918 = vmatpush3.bf16.msra.mxu0 %v2034_v33 }
0x1168   :  { %v1476_v36 = vadd.f32 %v1801_v8, %v2740_v16  ;;  %1481 = vadd.xlane.f32.xlu0 %v1479_v34  ;;  %1919 = vmatprep.subr.bf16.mxu0 %v2930_v3  ;;  %v2035_v16 = vld [vmem:[#allocation13 + $0x28] sm:$0xff]  }
0x116a   :  { %v1480_v4 = vadd.f32 %v1476_v36, %v2842_v31  ;;  %v2036_v31 = vld [vmem:[#allocation13 + $0x20] sm:$0xff]  }
0x116b   :  { %1920 = vmatpush3.bf16.msra.mxu0 %v2035_v16 }
0x116c   :  { %1483 = vadd.xlane.f32.xlu1 %v1480_v4  ;;  %1921 = vmatprep.subr.bf16.mxu0 %v2930_v3 }
0x116f   :  { %1922 = vmatpush3.bf16.msra.mxu0 %v2036_v31 }
0x1170   :  { %1923 = vmatprep.subr.bf16.mxu0 %v2930_v3 }
0x1173   :  { %1924 = vmatpush3.bf16.msra.mxu0 %v2037_v43 }
0x1174   :  { %1925 = vmatprep.subr.bf16.mxu0 %v2930_v3 }
0x1177   :  { %1926 = vmatpush3.bf16.msra.mxu0 %v2038_v45 }
0x1178   :  { %1927 = vmatprep.subr.bf16.mxu0 %v2930_v3 }
0x117b   :  { %1928 = vmatpush3.bf16.msra.mxu0 %v2039_v49 }
0x117c   :  { %1929 = vmatprep.subr.bf16.mxu0 %v2930_v3 }
0x117f   :  { %1930 = vmatpush3.bf16.msra.mxu0 %v2040_v40 }
0x11f1   :  { %v1482_v26 = vpop.xlane.xlu0 %1481 }
0x11f2   :  { %v1485_v27 = vmul.f32 0.0078125, %v1482_v26 }
0x11f4   :  { %v1487_v24 = vsub.f32 %v1479_v34, %v1485_v27 }
0x11f5   :  { %v1484_v23 = vpop.xlane.xlu1 %1483 }
0x11f6   :  { %v1486_v20 = vmul.f32 0.0078125, %v1484_v23  ;;  %v1489_v60 = vmul.f32 %v1487_v24, %v1487_v24 }
0x11f8   :  { %v1488_v54 = vsub.f32 %v1480_v4, %v1486_v20  ;;  %1491 = vadd.xlane.f32.xlu0 %v1489_v60 }
0x11fa   :  { %v1490_v57 = vmul.f32 %v1488_v54, %v1488_v54 }
0x11fc   :  { %1493 = vadd.xlane.f32.xlu1 %v1490_v57 }
0x1281   :  { %v1492_v56 = vpop.xlane.xlu0 %1491 }
0x1282   :  { %v1495_v58 = vmul.f32 0.0078125, %v1492_v56 }
0x1284   :  { %v1497_v61 = vadd.f32 1e-12, %v1495_v58 }
0x1285   :  { %v1494_v14 = vpop.xlane.xlu1 %1493 }
0x1286   :  { %2089 = vrsqrt.f32 %v1497_v61  ;;  %v1496_v62 = vmul.f32 0.0078125, %v1494_v14 }
0x1288   :  { %v1498_v0 = vadd.f32 1e-12, %v1496_v62 }
0x128a   :  { %2091 = vrsqrt.f32 %v1498_v0 }
0x1293   :  { %v2090_v1 = vpop.eup %2089 }
0x1294   :  { %v1501_v15 = vmul.f32 %v2090_v1, %v1487_v24 }
0x1296   :  { %v1503_v7 = vmul.f32 %v1501_v15, %v2748_v21 }
0x1297   :  { %v2092_v17 = vpop.eup %2091 }
0x1298   :  { %v1502_v6 = vmul.f32 %v2092_v17, %v1488_v54  ;;  %v1505_v39 = vadd.f32 %v1503_v7, %v2752_v18 }
0x129a   :  { %v1504_v38 = vmul.f32 %v1502_v6, %v2748_v21 }
0x129c   :  { %v1506_v3 = vadd.f32 %v1504_v38, %v2752_v18 }
0x129e   :  { %v1507_v44 = vpack.c.bf16 %v1506_v3, %v1505_v39 }
0x12a0   :  { %1932 = vmatmul.mubr.bf16.vlgmr.msra.gmra.mxu0 %v1507_v44 }
0x1360   :  { %v1610_v52 = vpop.f32.mrf.mxu0 }
0x1361   :  { %v1611_v63 = vadd.f32 %v1610_v52, %v1527_v55 }
0x1362   :  { %v1933_v10 = vpop.f32.mrf.mxu0 }
0x1363   :  { %1617 = vst [vmem:[#allocation16] sm:$0xff] %v1611_v63 }
0x1364   :  { %v1613_v19 = vpop.f32.mrf.mxu0 }
0x1365   :  { %v1614_v22 = vadd.f32 %v1613_v19, %v1527_v55 }
0x1366   :  { %v1934_v25 = vpop.f32.mrf.mxu0 }
0x1367   :  { %1618 = vst [vmem:[#allocation16 + $0x8] sm:$0xff] %v1614_v22 }
0x1368   :  { %2265 = shalt.err (!%p2262_p2)
}
0x1369   :  { %1630 = dma.vmem_to_hbm [thread:$0]  %s1625_s7, 256, %s2882_s8, [#allocation4], %s2288_s10, %s2288_s10, %s2289_s11  }
0x136a   :  { %2284 = dma.done.wait [#allocation4], 256  }
0x136b   :  { %2285 = vsyncadd [#allocation4], 4294967040 }
0x136c   :  { %1634 = vsyncpa [#allocation3], 1 }
0x136d   :  { %1635 = vsyncpa [#allocation6], 1 }
0x136e   :  { %1636 = vsyncpa [#allocation9], 1 }
0x136f   :  { %1637 = vsyncpa [#allocation12], 1 }
0x1370   :  { %1638 = vsyncpa [#allocation15], 1 }
0x1371   :  { %1639 = vsyncpa [#allocation4], 1 }

</bundles_post_ra>
